<compile_context>
chip_gen: v7x
topology: tpu7x:2x2x1
jax: 0.10.0
libtpu: 0.0.40
codegen_flags: <defaults>
</compile_context>

<pallas_src>
import functools

import jax
import jax.numpy as jnp
import numpy as np
from jax.experimental import pallas as pl
from jax.experimental.pallas import tpu as pltpu

C_IMG = 3        # image channels
C_POSE = 7       # pose dim
C_R = 254        # true Pool representation size
C_R_PAD = 256    # lane-aligned padded representation size


def _pool_kernel(frames_ref, poses_ref, wf_ref, wp_ref, bias_ref, r_ref):
    """One grid step = one batch element; all K views processed in one shot.

    frames_ref : (K, 3, hw)   -- channels on sublanes, pixels on lanes
    poses_ref  : (K, 7)
    wf_ref     : (3, 256), wp_ref: (7, 256), bias_ref: (1, 256)
    r_ref      : (1, 256)     -- pooled representation summed over views
    """
    num_views, _, hw = frames_ref.shape
    inv_hw = 1.0 / hw

    # Pose contribution for all K views at once (hoisted out of the per-view loop).
    pc = jnp.dot(poses_ref[...], wp_ref[...],
                 preferred_element_type=jnp.float32) + bias_ref[...]      # (K, 256)

    acc = jnp.zeros((1, r_ref.shape[-1]), jnp.float32)
    for k in range(num_views):                        # static K, unrolled
        x_k = frames_ref[k]                           # (3, hw)
        # 1x1 conv == channel contraction: (3, hw)^T @ (3, 256) -> (hw, 256), lane dense.
        y = jax.lax.dot_general(
            x_k, wf_ref[...],
            dimension_numbers=(((0,), (0,)), ((), ())),
            preferred_element_type=jnp.float32)       # (hw, 256)
        y = jnp.maximum(y + pc[k:k + 1, :], 0.0)      # ReLU with pose/bias broadcast
        acc = acc + jnp.sum(y, axis=0, keepdims=True)

    # Global average pool over hw, summed over the K views; write straight to output.
    r_ref[...] = acc * inv_hw


def pool_sum_pallas(view_frames, view_poses, wf, wp, bias):
    """Computes r = sum_k Pool(view_frames[:,k], view_poses[:,k]) with a Pallas kernel.

    view_frames: (bs, K, 3, H, W)  float32  (NCHW per view, as in PyTorch)
    view_poses : (bs, K, 7)        float32
    wf, wp, bias: padded weights (3, 256), (7, 256), (1, 256) (padding columns zero)
    returns r : (bs, 254)
    """
    bs, K, C, H, W = view_frames.shape
    assert C == C_IMG
    hw = H * W

    # Pure reshape (no transpose): pixels stay on the lane axis, channels on sublanes.
    frames = view_frames.reshape(bs, K, C, hw)

    r_pad = pl.pallas_call(
        _pool_kernel,
        out_shape=jax.ShapeDtypeStruct((bs, 1, C_R_PAD), jnp.float32),
        grid_spec=pltpu.PrefetchScalarGridSpec(
            num_scalar_prefetch=0,
            grid=(bs,),
            in_specs=[
                pl.BlockSpec((None, K, C_IMG, hw), lambda b: (b, 0, 0, 0)),
                pl.BlockSpec((None, K, C_POSE), lambda b: (b, 0, 0)),
                pl.BlockSpec((C_IMG, C_R_PAD), lambda b: (0, 0)),
                pl.BlockSpec((C_POSE, C_R_PAD), lambda b: (0, 0)),
                pl.BlockSpec((1, C_R_PAD), lambda b: (0, 0)),
            ],
            out_specs=pl.BlockSpec((None, 1, C_R_PAD), lambda b: (b, 0, 0)),
        ),
        compiler_params=pltpu.CompilerParams(
            dimension_semantics=("parallel",)),
    )(frames, view_poses, wf, wp, bias)

    return r_pad[:, 0, :C_R]


def gqn_composer_forward(view_frames, view_poses, query_poses, params,
                         num_copies=0):
    """Pallas-backed equivalent of GQN_Composer.forward."""
    wf, wp, bias = params
    bs = view_frames.shape[0]
    Q = query_poses.shape[1]

    r = pool_sum_pallas(view_frames, view_poses, wf, wp, bias)          # (bs, 254)

    # Tiny epilogue left to XLA (lane-padded slab only worthwhile at large Q/bs).
    r_rep = jnp.broadcast_to(r[:, None, :], (bs, Q, C_R))               # repeat over queries
    parts = [query_poses[:, :, :2]] + [query_poses] * num_copies + [r_rep]
    embeddings = jnp.concatenate(parts, axis=2)
    assert embeddings.shape == (bs, Q, 256 + num_copies * C_POSE)
    return embeddings


def gqn_composer_ref(view_frames, view_poses, query_poses, params,
                     num_copies=0):
    """Pure-JAX reference for correctness checking."""
    wf, wp, bias = params
    bs, K, C, H, W = view_frames.shape
    Q = query_poses.shape[1]
    hw = H * W

    x = view_frames.reshape(bs, K, C, hw)
    y = jnp.einsum('bkcp,cd->bkpd', x, wf[:, :C_R],
                   precision=jax.lax.Precision.HIGHEST)
    pc = jnp.einsum('bkc,cd->bkd', view_poses, wp[:, :C_R],
                    precision=jax.lax.Precision.HIGHEST) + bias[:, :C_R]
    y = jnp.maximum(y + pc[:, :, None, :], 0.0)
    r = jnp.sum(jnp.mean(y, axis=2), axis=1)                            # (bs, 254)

    r_rep = jnp.broadcast_to(r[:, None, :], (bs, Q, C_R))
    parts = [query_poses[:, :, :2]] + [query_poses] * num_copies + [r_rep]
    return jnp.concatenate(parts, axis=2)


def init_params(key):
    """Deterministic Pool() parameters: 1x1 conv (3 + 7 -> 254), padded to 256 lanes.

    Padding columns 254..255 are exactly zero, so after ReLU they stay zero and the
    wrapper's slice back to 254 channels is exact.
    """
    k1, k2, k3 = jax.random.split(key, 3)
    wf = jax.random.normal(k1, (C_IMG, C_R), jnp.float32) * 0.1
    wp = jax.random.normal(k2, (C_POSE, C_R), jnp.float32) * 0.1
    bias = jax.random.normal(k3, (1, C_R), jnp.float32) * 0.1
    pad = C_R_PAD - C_R
    wf = jnp.pad(wf, ((0, 0), (0, pad)))
    wp = jnp.pad(wp, ((0, 0), (0, pad)))
    bias = jnp.pad(bias, ((0, 0), (0, pad)))
    return wf, wp, bias


if __name__ == "__main__":
    key = jax.random.PRNGKey(0)
    kp, kf, kvp, kq = jax.random.split(key, 4)

    bs, K, H, W, Q = 2, 3, 16, 16, 5
    num_copies = 1

    params = init_params(kp)
    view_frames = jax.random.normal(kf, (bs, K, C_IMG, H, W), jnp.float32)
    view_poses = jax.random.normal(kvp, (bs, K, C_POSE), jnp.float32)
    query_poses = jax.random.normal(kq, (bs, Q, C_POSE), jnp.float32)

    fwd = jax.jit(functools.partial(gqn_composer_forward, num_copies=num_copies))
    out = jax.block_until_ready(fwd(view_frames, view_poses, query_poses, params))

    ref = jax.block_until_ready(
        gqn_composer_ref(view_frames, view_poses, query_poses, params,
                         num_copies=num_copies))

    assert out.shape == (bs, Q, 256 + num_copies * C_POSE), out.shape
    np.testing.assert_allclose(np.asarray(out), np.asarray(ref),
                               rtol=1e-3, atol=1e-3)
    print("KERNEL_OK")
</pallas_src>

<mosaic_0001>
module attributes {stable_mosaic.version = 11 : i64} {
  func.func @_pool_kernel(%arg0: i32, %arg1: memref<1x3x3x256xf32, #tpu.memory_space<vmem>>, %arg2: memref<1x3x7xf32, #tpu.memory_space<vmem>>, %arg3: memref<3x256xf32, #tpu.memory_space<vmem>>, %arg4: memref<7x256xf32, #tpu.memory_space<vmem>>, %arg5: memref<1x256xf32, #tpu.memory_space<vmem>>, %arg6: memref<1x1x256xf32, #tpu.memory_space<vmem>>) attributes {dimension_semantics = [#tpu.dimension_semantics<parallel>], iteration_bounds = array<i64: 2>, scalar_prefetch = 0 : i64, scratch_operands = 0 : i64, tpu.core_type = #tpu.core_type<tc>, window_params = [{transform_indices = @transform_0, window_bounds = array<i64: 1, 3, 3, 256>}, {transform_indices = @transform_1, window_bounds = array<i64: 1, 3, 7>}, {pipeline_mode = #tpu.pipeline_mode<synchronous>, transform_indices = @transform_2, window_bounds = array<i64: 3, 256>}, {pipeline_mode = #tpu.pipeline_mode<synchronous>, transform_indices = @transform_3, window_bounds = array<i64: 7, 256>}, {pipeline_mode = #tpu.pipeline_mode<synchronous>, transform_indices = @transform_4, window_bounds = array<i64: 1, 256>}, {transform_indices = @transform_5, window_bounds = array<i64: 1, 1, 256>}]} {
    %c0 = arith.constant 0 : index
    %c0_0 = arith.constant 0 : index
    %c0_1 = arith.constant 0 : index
    %0 = vector.load %arg2[%c0, %c0_0, %c0_1] : memref<1x3x7xf32, #tpu.memory_space<vmem>>, vector<1x3x7xf32>
    %1 = vector.shape_cast %0 : vector<1x3x7xf32> to vector<3x7xf32>
    %c0_2 = arith.constant 0 : index
    %c0_3 = arith.constant 0 : index
    %2 = vector.load %arg4[%c0_2, %c0_3] : memref<7x256xf32, #tpu.memory_space<vmem>>, vector<7x256xf32>
    %cst = arith.constant dense<0.000000e+00> : vector<3x256xf32>
    %3 = tpu.matmul %1, %2, %cst {dimension_numbers = #tpu.dot_dimension_numbers<[1], [0], [0], [1], [0, 0, 1, 1], [], []>} : vector<3x7xf32>, vector<7x256xf32>, vector<3x256xf32> -> vector<3x256xf32>
    %c0_4 = arith.constant 0 : index
    %c0_5 = arith.constant 0 : index
    %4 = vector.load %arg5[%c0_4, %c0_5] : memref<1x256xf32, #tpu.memory_space<vmem>>, vector<1x256xf32>
    %5 = vector.broadcast %4 : vector<1x256xf32> to vector<3x256xf32>
    %6 = arith.addf %3, %5 : vector<3x256xf32>
    %cst_6 = arith.constant 0.000000e+00 : f32
    %7 = vector.broadcast %cst_6 : f32 to vector<1x256xf32>
    %c0_7 = arith.constant 0 : index
    %c0_8 = arith.constant 0 : index
    %c0_9 = arith.constant 0 : index
    %c0_10 = arith.constant 0 : index
    %8 = vector.load %arg1[%c0_7, %c0_8, %c0_9, %c0_10] : memref<1x3x3x256xf32, #tpu.memory_space<vmem>>, vector<1x1x3x256xf32>
    %9 = vector.shape_cast %8 : vector<1x1x3x256xf32> to vector<3x256xf32>
    %c0_11 = arith.constant 0 : index
    %c0_12 = arith.constant 0 : index
    %10 = vector.load %arg3[%c0_11, %c0_12] : memref<3x256xf32, #tpu.memory_space<vmem>>, vector<3x256xf32>
    %cst_13 = arith.constant dense<0.000000e+00> : vector<256x256xf32>
    %11 = tpu.matmul %9, %10, %cst_13 {dimension_numbers = #tpu.dot_dimension_numbers<[0], [0], [1], [1], [0, 1, 1, 1], [], []>} : vector<3x256xf32>, vector<3x256xf32>, vector<256x256xf32> -> vector<256x256xf32>
    %12 = vector.extract_strided_slice %6 {offsets = [0, 0], sizes = [1, 256], strides = [1, 1]} : vector<3x256xf32> to vector<1x256xf32>
    %13 = vector.broadcast %12 : vector<1x256xf32> to vector<256x256xf32>
    %14 = arith.addf %11, %13 : vector<256x256xf32>
    %cst_14 = arith.constant 0.000000e+00 : f32
    %15 = vector.broadcast %cst_14 : f32 to vector<256x256xf32>
    %16 = arith.maximumf %14, %15 : vector<256x256xf32>
    %cst_15 = arith.constant dense<0.000000e+00> : vector<256xf32>
    %17 = vector.multi_reduction <add>, %16, %cst_15 [0] : vector<256x256xf32> to vector<256xf32>
    %18 = vector.shape_cast %17 : vector<256xf32> to vector<1x256xf32>
    %19 = arith.addf %7, %18 : vector<1x256xf32>
    %c0_16 = arith.constant 0 : index
    %c1 = arith.constant 1 : index
    %c0_17 = arith.constant 0 : index
    %c0_18 = arith.constant 0 : index
    %20 = vector.load %arg1[%c0_16, %c1, %c0_17, %c0_18] : memref<1x3x3x256xf32, #tpu.memory_space<vmem>>, vector<1x1x3x256xf32>
    %21 = vector.shape_cast %20 : vector<1x1x3x256xf32> to vector<3x256xf32>
    %c0_19 = arith.constant 0 : index
    %c0_20 = arith.constant 0 : index
    %22 = vector.load %arg3[%c0_19, %c0_20] : memref<3x256xf32, #tpu.memory_space<vmem>>, vector<3x256xf32>
    %cst_21 = arith.constant dense<0.000000e+00> : vector<256x256xf32>
    %23 = tpu.matmul %21, %22, %cst_21 {dimension_numbers = #tpu.dot_dimension_numbers<[0], [0], [1], [1], [0, 1, 1, 1], [], []>} : vector<3x256xf32>, vector<3x256xf32>, vector<256x256xf32> -> vector<256x256xf32>
    %24 = vector.extract_strided_slice %6 {offsets = [1, 0], sizes = [1, 256], strides = [1, 1]} : vector<3x256xf32> to vector<1x256xf32>
    %25 = vector.broadcast %24 : vector<1x256xf32> to vector<256x256xf32>
    %26 = arith.addf %23, %25 : vector<256x256xf32>
    %cst_22 = arith.constant 0.000000e+00 : f32
    %27 = vector.broadcast %cst_22 : f32 to vector<256x256xf32>
    %28 = arith.maximumf %26, %27 : vector<256x256xf32>
    %cst_23 = arith.constant dense<0.000000e+00> : vector<256xf32>
    %29 = vector.multi_reduction <add>, %28, %cst_23 [0] : vector<256x256xf32> to vector<256xf32>
    %30 = vector.shape_cast %29 : vector<256xf32> to vector<1x256xf32>
    %31 = arith.addf %19, %30 : vector<1x256xf32>
    %c0_24 = arith.constant 0 : index
    %c2 = arith.constant 2 : index
    %c0_25 = arith.constant 0 : index
    %c0_26 = arith.constant 0 : index
    %32 = vector.load %arg1[%c0_24, %c2, %c0_25, %c0_26] : memref<1x3x3x256xf32, #tpu.memory_space<vmem>>, vector<1x1x3x256xf32>
    %33 = vector.shape_cast %32 : vector<1x1x3x256xf32> to vector<3x256xf32>
    %c0_27 = arith.constant 0 : index
    %c0_28 = arith.constant 0 : index
    %34 = vector.load %arg3[%c0_27, %c0_28] : memref<3x256xf32, #tpu.memory_space<vmem>>, vector<3x256xf32>
    %cst_29 = arith.constant dense<0.000000e+00> : vector<256x256xf32>
    %35 = tpu.matmul %33, %34, %cst_29 {dimension_numbers = #tpu.dot_dimension_numbers<[0], [0], [1], [1], [0, 1, 1, 1], [], []>} : vector<3x256xf32>, vector<3x256xf32>, vector<256x256xf32> -> vector<256x256xf32>
    %36 = vector.extract_strided_slice %6 {offsets = [2, 0], sizes = [1, 256], strides = [1, 1]} : vector<3x256xf32> to vector<1x256xf32>
    %37 = vector.broadcast %36 : vector<1x256xf32> to vector<256x256xf32>
    %38 = arith.addf %35, %37 : vector<256x256xf32>
    %cst_30 = arith.constant 0.000000e+00 : f32
    %39 = vector.broadcast %cst_30 : f32 to vector<256x256xf32>
    %40 = arith.maximumf %38, %39 : vector<256x256xf32>
    %cst_31 = arith.constant dense<0.000000e+00> : vector<256xf32>
    %41 = vector.multi_reduction <add>, %40, %cst_31 [0] : vector<256x256xf32> to vector<256xf32>
    %42 = vector.shape_cast %41 : vector<256xf32> to vector<1x256xf32>
    %43 = arith.addf %31, %42 : vector<1x256xf32>
    %cst_32 = arith.constant 3.906250e-03 : f32
    %44 = vector.broadcast %cst_32 : f32 to vector<1x256xf32>
    %45 = arith.mulf %43, %44 : vector<1x256xf32>
    %c0_33 = arith.constant 0 : index
    %c0_34 = arith.constant 0 : index
    %c0_35 = arith.constant 0 : index
    %46 = vector.load %arg6[%c0_33, %c0_34, %c0_35] : memref<1x1x256xf32, #tpu.memory_space<vmem>>, vector<1x1x256xf32>
    %47 = vector.shape_cast %46 : vector<1x1x256xf32> to vector<1x256xf32>
    %48 = vector.shape_cast %45 : vector<1x256xf32> to vector<1x1x256xf32>
    tpu.vector_store %arg6[%c0_33, %c0_34, %c0_35], %48 {strides = array<i32>} : memref<1x1x256xf32, #tpu.memory_space<vmem>>, vector<1x1x256xf32>,
    return
  }
  func.func @transform_0(%arg0: i32) -> (i32, i32, i32, i32) {
    %c0_i32 = arith.constant 0 : i32
    %c0_i32_0 = arith.constant 0 : i32
    %c0_i32_1 = arith.constant 0 : i32
    %c0_i32_2 = arith.constant 0 : i32
    return %arg0, %c0_i32, %c0_i32_0, %c0_i32_1 : i32, i32, i32, i32
  }
  func.func @transform_1(%arg0: i32) -> (i32, i32, i32) {
    %c0_i32 = arith.constant 0 : i32
    %c0_i32_0 = arith.constant 0 : i32
    %c0_i32_1 = arith.constant 0 : i32
    return %arg0, %c0_i32, %c0_i32_0 : i32, i32, i32
  }
  func.func @transform_2(%arg0: i32) -> (i32, i32) {
    %c0_i32 = arith.constant 0 : i32
    %c0_i32_0 = arith.constant 0 : i32
    %c0_i32_1 = arith.constant 0 : i32
    return %c0_i32, %c0_i32_0 : i32, i32
  }
  func.func @transform_3(%arg0: i32) -> (i32, i32) {
    %c0_i32 = arith.constant 0 : i32
    %c0_i32_0 = arith.constant 0 : i32
    %c0_i32_1 = arith.constant 0 : i32
    return %c0_i32, %c0_i32_0 : i32, i32
  }
  func.func @transform_4(%arg0: i32) -> (i32, i32) {
    %c0_i32 = arith.constant 0 : i32
    %c0_i32_0 = arith.constant 0 : i32
    %c0_i32_1 = arith.constant 0 : i32
    return %c0_i32, %c0_i32_0 : i32, i32
  }
  func.func @transform_5(%arg0: i32) -> (i32, i32, i32) {
    %c0_i32 = arith.constant 0 : i32
    %c0_i32_0 = arith.constant 0 : i32
    %c0_i32_1 = arith.constant 0 : i32
    return %arg0, %c0_i32, %c0_i32_0 : i32, i32, i32
  }
}

</mosaic_0001>

<bundles_post_ra>
// kernel: gqn_composer_forward.1
= control target key start
LH: loop header
LB: loop body
LE: loop exit
PB: predicated region body
PF: predicated region fallthrough
CT: control target
= control target key end

     0   :  { %s2319_s18 = smov 0   ;;  %s2890_s0 = inlined_call_operand.vmem [shape: f32[2,3,3,256], index: 0, kind: input, shape index: {}]   ;;  %s2891_s1 = inlined_call_operand.vmem [shape: f32[2,3,7], index: 1, kind: input, shape index: {}]   ;;  %s2892_s2 = inlined_call_operand.vmem [shape: f32[3,256], index: 2, kind: input, shape index: {}]   ;;  %s2893_s3 = inlined_call_operand.vmem [shape: f32[7,256], index: 3, kind: input, shape index: {}]   ;;  %s2894_s4 = inlined_call_operand.vmem [shape: f32[1,256], index: 4, kind: input, shape index: {}]   ;;  %s2895_s5 = inlined_call_operand.vmem [shape: f32[2,1,256], index: 5, kind: output, shape index: {}]  }
   0x1 LB: > { %s2145_s19 = sadd.s32 4294967295, %s2285_s18   ;;  %p2149_p0 = scmp.ge.s32.totalorder %s2285_s18, 1  ;;  %s2285_s18 = sphi %s2319_s18, %s15_s18  }
   0x2   : > { %p196_p1 = scmp.lt.s32.totalorder %s2285_s18, 3 }
   0x4   : > { %p197_p2 = pnand %p2149_p0, %p196_p1 }
   0x5   : > { %p227_p3 = scmp.lt.s32.totalorder (!%p197_p2), %s2145_s19, 1  ;;  %v242_v0 = vld [vmem:[%s2893_s3 + $0x8] sm:$0x7f] (!%p197_p2)  ;;  %vm259_vm0 = vcmask (!%p197_p2), 1046528   ;;  %v241_v1 = vld [vmem:[%s2893_s3] sm:$0x7f] (!%p197_p2) }
   0x6   : > { %200 = sbr.rel (%p197_p2) target bundleno = 641 (0x281), region = 40  ;;  %2153 = vmatprep.subr.msk.mxu0 (!%p197_p2), %vm259_vm0, %v242_v0  ;;  %v2336_v2 = vld [vmem:[%s2892_s2] sm:$0x77] (!%p197_p2)  ;;  %vm513_vm1 = vcmask (!%p197_p2), 1042432   ;;  %v2287_v3 = vmov (!%p197_p2), 0.0   ;;  %vm255_vm2 = vcmask (!%p197_p2), 56320  }
   0x7   : > { %2154 = vmatpush1.msk.msra.mxu0 (!%p197_p2), %vm259_vm0, %v241_v1  ;;  %330 = vmatprep.mubr.f32.mxu0 (!%p197_p2), %v2287_v3  ;;  %v415_v4 = vcombine.high (!%p197_p2), %v2336_v2, %v2336_v2  ;;  %vm416_vm3 = vcmask (!%p197_p2), 23552  }
   0x8   : > { %672 = vmatprep.mubr.f32.mxu1 (!%p197_p2), %v2287_v3 }
   0x9   : > { %2156 = vmatprep.subr.msk.mxu0 (!%p197_p2), %vm513_vm1, %v415_v4  ;;  %2262 = vmatprep.subr.msk.mxu1 (!%p197_p2), %vm513_vm1, %v415_v4 }
   0xa   : > { %2263 = vmatpush1.msk.msra.mxu1 (!%p197_p2), %vm513_vm1, %v2336_v2 }
   0xb   : > { %2226 = vmatprep.subr.msk.mxu1 (!%p197_p2), %vm513_vm1, %v415_v4 }
   0xd   : > { %s2897_s19 = smov (!%p227_p3, %s2145_s19), 1 }
   0xe   : > { %s2264_s26 = smul.u32 24, %s2897_s19  ;;  %s2151_s27 = sshll.u32 %s2897_s19, 2 }
   0xf   : > { %s235_s8 = scalar_lea.vmem %s2891_s1, %s2151_s27  ;;  %s2152_s11 = sshll.u32 %s2897_s19, 1 }
  0x10   : > { %s231_s30 = scalar_lea.vmem %s2890_s0, %s2264_s26  ;;  %v240_v7 = vld [vmem:[%s235_s8] sm:$0x7]  ;;  %s239_s14 = scalar_lea.vmem %s2895_s5, %s2152_s11 }
  0x11   : > { %v337_v5 = vld [vmem:[%s231_s30] sm:$0x77]  ;;  %v2190_v6 = vld [vmem:[%s231_s30 + $0x8] sm:$0x77]  ;;  %2155 = vmatmul.mubr.msk.f32.vlgmr.msra.gmra.mrb[0].mxu0 %vm255_vm2, %v240_v7  ;;  %v2225_v9 = vld [vmem:[%s231_s30 + $0x10] sm:$0x77] }
  0x12   : > { %350 = vxpose.xlu0.b32.start.end [1/1] (short) %v337_v5, 128  ;;  %928 = vxpose.xlu1.b32.start.end [1/1] (short) %v2190_v6, 128  ;;  %v348_v8 = vcombine.high %v337_v5, %v337_v5  ;;  %v926_v10 = vcombine.high %v2190_v6, %v2190_v6  ;;  %v1496_v11 = vcombine.high %v2225_v9, %v2225_v9 }
  0x13   : > { %2157 = vmatpush1.msk.msra.mxu0 %vm513_vm1, %v2336_v2  ;;  %582 = vmatprep.mubr.f32.mxu0 %v2287_v3 }
  0x14   : > { %2191 = vmatprep.subr.msk.mxu0 %vm513_vm1, %v415_v4 }
  0x4f   : > { %382 = vxpose.xlu0.b32.start.end [1/1] (short) %v348_v8, 128  ;;  %1498 = vxpose.xlu1.b32.start.end [1/1] (short) %v2225_v9, 128 }
  0x8c   : > { %960 = vxpose.xlu0.b32.start.end [1/1] (short) %v926_v10, 128  ;;  %1530 = vxpose.xlu1.b32.start.end [1/1] (short) %v1496_v11, 128 }
  0x92   : > { %v366_v12 = vpop.trf.xlu0  ;;  %v2361_v13 = vpop.trf.xlu1 }
  0x93   : > { %2158 = vmatmul.mubr.msk.f32.vlgmr.msra.gmra.mrb[2].mxu0 %vm416_vm3, %v366_v12 }
  0x94   : > { %588 = vmatprep.mubr.f32.mxu0 %v2287_v3  ;;  %2192 = vmatpush1.msk.msra.mxu0 %vm513_vm1, %v2336_v2 }
  0x96   : > { %v367_v14 = vpop.trf.xlu0  ;;  %v2367_v15 = vpop.trf.xlu1 }
  0x97   : > { %2159 = vmatmul.mubr.msk.f32.gmra.mrb[4].mxu0 %vm416_vm3, %v367_v14 }
  0x98   : > { %594 = vmatprep.mubr.f32.mxu0 %v2287_v3 }
  0x9a   : > { %v368_v16 = vpop.trf.xlu0  ;;  %v2371_v17 = vpop.trf.xlu1 }
  0x9b   : > { %2160 = vmatmul.mubr.msk.f32.gmra.mrb[6].mxu0 %vm416_vm3, %v368_v16 }
  0x9c   : > { %600 = vmatprep.mubr.f32.mxu0 %v2287_v3 }
  0x9e   : > { %v369_v18 = vpop.trf.xlu0  ;;  %v2375_v19 = vpop.trf.xlu1 }
  0x9f   : > { %2161 = vmatmul.mubr.msk.f32.gmra.mrb[8].mxu0 %vm416_vm3, %v369_v18 }
  0xa0   : > { %606 = vmatprep.mubr.f32.mxu0 %v2287_v3 }
  0xa2   : > { %v370_v20 = vpop.trf.xlu0  ;;  %v2379_v21 = vpop.trf.xlu1 }
  0xa3   : > { %2162 = vmatmul.mubr.msk.f32.gmra.mrb[10].mxu0 %vm416_vm3, %v370_v20 }
  0xa4   : > { %612 = vmatprep.mubr.f32.mxu0 %v2287_v3 }
  0xa6   : > { %v371_v22 = vpop.trf.xlu0  ;;  %v2383_v23 = vpop.trf.xlu1 }
  0xa7   : > { %2163 = vmatmul.mubr.msk.f32.gmra.mrb[12].mxu0 %vm416_vm3, %v371_v22 }
  0xa8   : > { %618 = vmatprep.mubr.f32.mxu0 %v2287_v3 }
  0xaa   : > { %v372_v24 = vpop.trf.xlu0  ;;  %v2387_v25 = vpop.trf.xlu1 }
  0xab   : > { %2164 = vmatmul.mubr.msk.f32.gmra.mrb[14].mxu0 %vm416_vm3, %v372_v24 }
  0xac   : > { %624 = vmatprep.mubr.f32.mxu0 %v2287_v3 }
  0xae   : > { %v373_v26 = vpop.trf.xlu0  ;;  %v2391_v27 = vpop.trf.xlu1 }
  0xaf   : > { %2165 = vmatmul.mubr.msk.f32.gmra.mrb[16].mxu0 %vm416_vm3, %v373_v26 }
  0xb0   : > { %630 = vmatprep.mubr.f32.mxu0 %v2287_v3 }
  0xb2   : > { %v374_v28 = vpop.trf.xlu0  ;;  %v2395_v29 = vpop.trf.xlu1 }
  0xb3   : > { %2166 = vmatmul.mubr.msk.f32.gmra.mrb[18].mxu0 %vm416_vm3, %v374_v28 }
  0xb4   : > { %636 = vmatprep.mubr.f32.mxu0 %v2287_v3 }
  0xb6   : > { %v375_v30 = vpop.trf.xlu0  ;;  %v2399_v31 = vpop.trf.xlu1 }
  0xb7   : > { %2167 = vmatmul.mubr.msk.f32.gmra.mrb[20].mxu0 %vm416_vm3, %v375_v30 }
  0xb8   : > { %642 = vmatprep.mubr.f32.mxu0 %v2287_v3 }
  0xba   : > { %v376_v32 = vpop.trf.xlu0  ;;  %v2403_v33 = vpop.trf.xlu1 }
  0xbb   : > { %2168 = vmatmul.mubr.msk.f32.gmra.mrb[22].mxu0 %vm416_vm3, %v376_v32 }
  0xbc   : > { %648 = vmatprep.mubr.f32.mxu0 %v2287_v3 }
  0xbe   : > { %v377_v34 = vpop.trf.xlu0  ;;  %v2407_v35 = vpop.trf.xlu1 }
  0xbf   : > { %2169 = vmatmul.mubr.msk.f32.gmra.mrb[24].mxu0 %vm416_vm3, %v377_v34 }
  0xc0   : > { %654 = vmatprep.mubr.f32.mxu0 %v2287_v3 }
  0xc2   : > { %v378_v36 = vpop.trf.xlu0  ;;  %v2411_v37 = vpop.trf.xlu1 }
  0xc3   : > { %2170 = vmatmul.mubr.msk.f32.gmra.mrb[26].mxu0 %vm416_vm3, %v378_v36  ;;  %v245_v36 = vlaneseq }
  0xc4   : > { %660 = vmatprep.mubr.f32.mxu0 %v2287_v3 }
  0xc5   : > { %vm2077_vm4 = vcmp.lt.s32.totalorder %v245_v36, 256 }
  0xc6   : > { %v379_v38 = vpop.trf.xlu0  ;;  %v2415_v39 = vpop.trf.xlu1 }
  0xc7   : > { %2171 = vmatmul.mubr.msk.f32.gmra.mrb[28].mxu0 %vm416_vm3, %v379_v38  ;;  %v2608_v38 = vshrl.u32 %v245_v36, 7 }
  0xc8   : > { %666 = vmatprep.mubr.f32.mxu0 %v2287_v3 }
  0xca   : > { %v380_v40 = vpop.trf.xlu0  ;;  %v2419_v41 = vpop.trf.xlu1 }
  0xcb   : > { %2172 = vmatmul.mubr.msk.f32.gmra.mrb[30].mxu0 %vm416_vm3, %v380_v40  ;;  %v247_v40 = vsub.s32 0, %v2608_v38 }
  0xcc   : > { %1152 = vmatprep.mubr.f32.mxu0 %v2287_v3 }
  0xce   : > { %v381_v42 = vpop.trf.xlu0  ;;  %v2423_v43 = vpop.trf.xlu1 }
  0xcf   : > { %2173 = vmatmul.mubr.msk.f32.vlgmr.msra.gmra.mrb[0].mxu1 %vm416_vm3, %v381_v42  ;;  %2193 = vmatmul.mubr.msk.f32.vlgmr.msra.gmra.mrb[32].mxu0 %vm416_vm3, %v2361_v13  ;;  %v2618_v42 = vsub.s32 1, %v2608_v38 }
  0xd0   : > { %2227 = vmatpush1.msk.msra.mxu1 %vm513_vm1, %v2336_v2  ;;  %678 = vmatprep.mubr.f32.mxu1 %v2287_v3 }
  0xd1   : > { %1158 = vmatprep.mubr.f32.mxu0 %v2287_v3 }
  0xd2   : > { %v398_v44 = vpop.trf.xlu0  ;;  %v2432_v45 = vpop.trf.xlu1 }
  0xd3   : > { %2174 = vmatmul.mubr.msk.f32.gmra.mrb[2].mxu1 %vm416_vm3, %v398_v44  ;;  %2194 = vmatmul.mubr.msk.f32.gmra.mrb[34].mxu0 %vm416_vm3, %v2367_v15 }
  0xd4   : > { %684 = vmatprep.mubr.f32.mxu1 %v2287_v3  ;;  %1164 = vmatprep.mubr.f32.mxu0 %v2287_v3 }
  0xd6   : > { %v399_v46 = vpop.trf.xlu0  ;;  %v2444_v47 = vpop.trf.xlu1 }
  0xd7   : > { %2175 = vmatmul.mubr.msk.f32.gmra.mrb[4].mxu1 %vm416_vm3, %v399_v46  ;;  %2195 = vmatmul.mubr.msk.f32.gmra.mrb[36].mxu0 %vm416_vm3, %v2371_v17 }
  0xd8   : > { %690 = vmatprep.mubr.f32.mxu1 %v2287_v3  ;;  %1170 = vmatprep.mubr.f32.mxu0 %v2287_v3 }
  0xda   : > { %v400_v48 = vpop.trf.xlu0  ;;  %v2451_v50 = vpop.trf.xlu1 }
  0xdb   : > { %2176 = vmatmul.mubr.msk.f32.gmra.mrb[6].mxu1 %vm416_vm3, %v400_v48  ;;  %2196 = vmatmul.mubr.msk.f32.gmra.mrb[38].mxu0 %vm416_vm3, %v2375_v19 }
  0xdc   : > { %696 = vmatprep.mubr.f32.mxu1 %v2287_v3  ;;  %1176 = vmatprep.mubr.f32.mxu0 %v2287_v3 }
  0xde   : > { %v401_v49 = vpop.trf.xlu0  ;;  %v2463_v52 = vpop.trf.xlu1 }
  0xdf   : > { %2177 = vmatmul.mubr.msk.f32.gmra.mrb[8].mxu1 %vm416_vm3, %v401_v49  ;;  %2197 = vmatmul.mubr.msk.f32.gmra.mrb[40].mxu0 %vm416_vm3, %v2379_v21 }
  0xe0   : > { %702 = vmatprep.mubr.f32.mxu1 %v2287_v3  ;;  %1182 = vmatprep.mubr.f32.mxu0 %v2287_v3 }
  0xe2   : > { %v402_v51 = vpop.trf.xlu0  ;;  %v2474_v57 = vpop.trf.xlu1 }
  0xe3   : > { %2178 = vmatmul.mubr.msk.f32.gmra.mrb[10].mxu1 %vm416_vm3, %v402_v51  ;;  %2198 = vmatmul.mubr.msk.f32.gmra.mrb[42].mxu0 %vm416_vm3, %v2383_v23 }
  0xe4   : > { %708 = vmatprep.mubr.f32.mxu1 %v2287_v3  ;;  %1188 = vmatprep.mubr.f32.mxu0 %v2287_v3  ;;  %v2468_v54 = vpop.f32.mrb[0].mxu0 }
  0xe5   : > { %v2472_v55 = vpop.f32.mrb[1].mxu0 }
  0xe6   : > { %v403_v53 = vpop.trf.xlu0  ;;  %v2486_v59 = vpop.trf.xlu1 }
  0xe7   : > { %2179 = vmatmul.mubr.msk.f32.gmra.mrb[12].mxu1 %vm416_vm3, %v403_v53  ;;  %2199 = vmatmul.mubr.msk.f32.gmra.mrb[44].mxu0 %vm416_vm3, %v2387_v25 }
  0xe8   : > { %714 = vmatprep.mubr.f32.mxu1 %v2287_v3  ;;  %1194 = vmatprep.mubr.f32.mxu0 %v2287_v3 }
  0xea   : > { %v404_v56 = vpop.trf.xlu0  ;;  %v2493_v62 = vpop.trf.xlu1 }
  0xeb   : > { %2180 = vmatmul.mubr.msk.f32.gmra.mrb[14].mxu1 %vm416_vm3, %v404_v56  ;;  %2200 = vmatmul.mubr.msk.f32.gmra.mrb[46].mxu0 %vm416_vm3, %v2391_v27 }
  0xec   : > { %720 = vmatprep.mubr.f32.mxu1 %v2287_v3  ;;  %1200 = vmatprep.mubr.f32.mxu0 %v2287_v3 }
  0xee   : > { %v405_v58 = vpop.trf.xlu0  ;;  %v2505_v0 = vpop.trf.xlu1 }
  0xef   : > { %2181 = vmatmul.mubr.msk.f32.gmra.mrb[16].mxu1 %vm416_vm3, %v405_v58  ;;  %2201 = vmatmul.mubr.msk.f32.gmra.mrb[48].mxu0 %vm416_vm3, %v2395_v29 }
  0xf0   : > { %726 = vmatprep.mubr.f32.mxu1 %v2287_v3  ;;  %1206 = vmatprep.mubr.f32.mxu0 %v2287_v3 }
  0xf2   : > { %v406_v60 = vpop.trf.xlu0  ;;  %v2512_v4 = vpop.trf.xlu1 }
  0xf3   : > { %2182 = vmatmul.mubr.msk.f32.gmra.mrb[18].mxu1 %vm416_vm3, %v406_v60  ;;  %2202 = vmatmul.mubr.msk.f32.gmra.mrb[50].mxu0 %vm416_vm3, %v2399_v31 }
  0xf4   : > { %732 = vmatprep.mubr.f32.mxu1 %v2287_v3  ;;  %1212 = vmatprep.mubr.f32.mxu0 %v2287_v3 }
  0xf6   : > { %v407_v61 = vpop.trf.xlu0  ;;  %v2524_v6 = vpop.trf.xlu1 }
  0xf7   : > { %2183 = vmatmul.mubr.msk.f32.gmra.mrb[20].mxu1 %vm416_vm3, %v407_v61  ;;  %2203 = vmatmul.mubr.msk.f32.gmra.mrb[52].mxu0 %vm416_vm3, %v2403_v33 }
  0xf8   : > { %738 = vmatprep.mubr.f32.mxu1 %v2287_v3  ;;  %1218 = vmatprep.mubr.f32.mxu0 %v2287_v3 }
  0xfa   : > { %v408_v63 = vpop.trf.xlu0  ;;  %v1524_v9 = vpop.trf.xlu1 }
  0xfb   : > { %2184 = vmatmul.mubr.msk.f32.gmra.mrb[22].mxu1 %vm416_vm3, %v408_v63  ;;  %2204 = vmatmul.mubr.msk.f32.gmra.mrb[54].mxu0 %vm416_vm3, %v2407_v35 }
  0xfc   : > { %744 = vmatprep.mubr.f32.mxu1 %v2287_v3  ;;  %1224 = vmatprep.mubr.f32.mxu0 %v2287_v3 }
  0xfe   : > { %v409_v1 = vpop.trf.xlu0  ;;  %v1525_v11 = vpop.trf.xlu1 }
  0xff   : > { %2185 = vmatmul.mubr.msk.f32.gmra.mrb[24].mxu1 %vm416_vm3, %v409_v1  ;;  %2205 = vmatmul.mubr.msk.f32.gmra.mrb[56].mxu0 %vm416_vm3, %v2411_v37 }
 0x100   : > { %750 = vmatprep.mubr.f32.mxu1 %v2287_v3  ;;  %1230 = vmatprep.mubr.f32.mxu0 %v2287_v3 }
 0x102   : > { %v410_v2 = vpop.trf.xlu0  ;;  %v1526_v14 = vpop.trf.xlu1 }
 0x103   : > { %2186 = vmatmul.mubr.msk.f32.gmra.mrb[26].mxu1 %vm416_vm3, %v410_v2  ;;  %2206 = vmatmul.mubr.msk.f32.gmra.mrb[58].mxu0 %vm416_vm3, %v2415_v39 }
 0x104   : > { %756 = vmatprep.mubr.f32.mxu1 %v2287_v3  ;;  %1236 = vmatprep.mubr.f32.mxu0 %v2287_v3 }
 0x106   : > { %v411_v5 = vpop.trf.xlu0  ;;  %v1527_v16 = vpop.trf.xlu1 }
 0x107   : > { %2187 = vmatmul.mubr.msk.f32.gmra.mrb[28].mxu1 %vm416_vm3, %v411_v5  ;;  %2207 = vmatmul.mubr.msk.f32.gmra.mrb[60].mxu0 %vm416_vm3, %v2419_v41  ;;  %v243_v41 = vld [vmem:[%s2894_s4] sm:$0x3] }
 0x108   : > { %762 = vmatprep.mubr.f32.mxu1 %v2287_v3  ;;  %1242 = vmatprep.mubr.f32.mxu0 %v2287_v3  ;;  %v252_v44 = vrot.slane %v243_v41, %v2618_v42 }
 0x10a   : > { %v412_v7 = vpop.trf.xlu0  ;;  %v1528_v19 = vpop.trf.xlu1 }
 0x10b   : > { %2188 = vmatmul.mubr.msk.f32.gmra.mrb[30].mxu1 %vm416_vm3, %v412_v7  ;;  %2208 = vmatmul.mubr.msk.f32.gmra.mrb[62].mxu0 %vm416_vm3, %v2423_v43  ;;  %v248_v43 = vrot.slane %v243_v41, %v247_v40 }
 0x10c   : > { %768 = vmatprep.mubr.f32.mxu1 %v2287_v3  ;;  %1248 = vmatprep.mubr.f32.mxu0 %v2287_v3 }
 0x10d   : > { %v2625_v46 = vadd.f32 %v2468_v54, %v248_v43 }
 0x10e   : > { %v413_v8 = vpop.trf.xlu0  ;;  %v1529_v21 = vpop.trf.xlu1 }
 0x10f   : > { %2189 = vmatmul.mubr.msk.f32.gmra.mrb[32].mxu1 %vm416_vm3, %v413_v8  ;;  %v2632_v49 = vrot.slane %v2625_v46, %v247_v40 }
 0x110   : > { %1722 = vmatprep.mubr.f32.mxu1 %v2287_v3 }
 0x112   : > { %v976_v10 = vpop.trf.xlu0  ;;  %v1546_v24 = vpop.trf.xlu1 }
 0x113   : > { %2209 = vmatmul.mubr.msk.f32.gmra.mrb[64].mxu0 %vm416_vm3, %v976_v10  ;;  %2228 = vmatmul.mubr.msk.f32.vlgmr.msra.gmra.mrb[34].mxu1 %vm416_vm3, %v2432_v45 }
 0x114   : > { %1254 = vmatprep.mubr.f32.mxu0 %v2287_v3  ;;  %1728 = vmatprep.mubr.f32.mxu1 %v2287_v3 }
 0x116   : > { %v977_v12 = vpop.trf.xlu0  ;;  %v1547_v26 = vpop.trf.xlu1 }
 0x117   : > { %2210 = vmatmul.mubr.msk.f32.gmra.mrb[66].mxu0 %vm416_vm3, %v977_v12  ;;  %2229 = vmatmul.mubr.msk.f32.gmra.mrb[36].mxu1 %vm416_vm3, %v2444_v47  ;;  %v2629_v47 = vadd.f32 %v2472_v55, %v252_v44 }
 0x118   : > { %1260 = vmatprep.mubr.f32.mxu0 %v2287_v3  ;;  %1734 = vmatprep.mubr.f32.mxu1 %v2287_v3 }
 0x11a   : > { %v978_v13 = vpop.trf.xlu0  ;;  %v1548_v29 = vpop.trf.xlu1 }
 0x11b   : > { %2211 = vmatmul.mubr.msk.f32.gmra.mrb[68].mxu0 %vm416_vm3, %v978_v13  ;;  %2230 = vmatmul.mubr.msk.f32.gmra.mrb[38].mxu1 %vm416_vm3, %v2451_v50  ;;  %v2636_v50 = vrot.slane %v2629_v47, %v247_v40 }
 0x11c   : > { %1266 = vmatprep.mubr.f32.mxu0 %v2287_v3  ;;  %1740 = vmatprep.mubr.f32.mxu1 %v2287_v3 }
 0x11e   : > { %v979_v15 = vpop.trf.xlu0  ;;  %v1549_v31 = vpop.trf.xlu1 }
 0x11f   : > { %2212 = vmatmul.mubr.msk.f32.gmra.mrb[70].mxu0 %vm416_vm3, %v979_v15  ;;  %2231 = vmatmul.mubr.msk.f32.gmra.mrb[40].mxu1 %vm416_vm3, %v2463_v52 }
 0x120   : > { %1272 = vmatprep.mubr.f32.mxu0 %v2287_v3  ;;  %1746 = vmatprep.mubr.f32.mxu1 %v2287_v3 }
 0x122   : > { %v980_v17 = vpop.trf.xlu0  ;;  %v1550_v34 = vpop.trf.xlu1 }
 0x123   : > { %2213 = vmatmul.mubr.msk.f32.gmra.mrb[72].mxu0 %vm416_vm3, %v980_v17  ;;  %2232 = vmatmul.mubr.msk.f32.gmra.mrb[42].mxu1 %vm416_vm3, %v2474_v57 }
 0x124   : > { %1278 = vmatprep.mubr.f32.mxu0 %v2287_v3  ;;  %1752 = vmatprep.mubr.f32.mxu1 %v2287_v3 }
 0x126   : > { %v981_v18 = vpop.trf.xlu0  ;;  %v1551_v37 = vpop.trf.xlu1 }
 0x127   : > { %2214 = vmatmul.mubr.msk.f32.gmra.mrb[74].mxu0 %vm416_vm3, %v981_v18  ;;  %2233 = vmatmul.mubr.msk.f32.gmra.mrb[44].mxu1 %vm416_vm3, %v2486_v59 }
 0x128   : > { %1284 = vmatprep.mubr.f32.mxu0 %v2287_v3  ;;  %1758 = vmatprep.mubr.f32.mxu1 %v2287_v3 }
 0x12a   : > { %v982_v20 = vpop.trf.xlu0  ;;  %v1552_v39 = vpop.trf.xlu1 }
 0x12b   : > { %2215 = vmatmul.mubr.msk.f32.gmra.mrb[76].mxu0 %vm416_vm3, %v982_v20  ;;  %2234 = vmatmul.mubr.msk.f32.gmra.mrb[46].mxu1 %vm416_vm3, %v2493_v62 }
 0x12c   : > { %1290 = vmatprep.mubr.f32.mxu0 %v2287_v3  ;;  %1764 = vmatprep.mubr.f32.mxu1 %v2287_v3 }
 0x12e   : > { %v983_v22 = vpop.trf.xlu0  ;;  %v1553_v45 = vpop.trf.xlu1 }
 0x12f   : > { %2216 = vmatmul.mubr.msk.f32.gmra.mrb[78].mxu0 %vm416_vm3, %v983_v22  ;;  %2235 = vmatmul.mubr.msk.f32.gmra.mrb[48].mxu1 %vm416_vm3, %v2505_v0 }
 0x130   : > { %1296 = vmatprep.mubr.f32.mxu0 %v2287_v3  ;;  %1770 = vmatprep.mubr.f32.mxu1 %v2287_v3 }
 0x132   : > { %v984_v23 = vpop.trf.xlu0  ;;  %v1554_v48 = vpop.trf.xlu1 }
 0x133   : > { %2217 = vmatmul.mubr.msk.f32.gmra.mrb[80].mxu0 %vm416_vm3, %v984_v23  ;;  %2236 = vmatmul.mubr.msk.f32.gmra.mrb[50].mxu1 %vm416_vm3, %v2512_v4 }
 0x134   : > { %1302 = vmatprep.mubr.f32.mxu0 %v2287_v3  ;;  %1776 = vmatprep.mubr.f32.mxu1 %v2287_v3 }
 0x136   : > { %v985_v25 = vpop.trf.xlu0  ;;  %v1555_v55 = vpop.trf.xlu1 }
 0x137   : > { %2218 = vmatmul.mubr.msk.f32.gmra.mrb[82].mxu0 %vm416_vm3, %v985_v25  ;;  %2237 = vmatmul.mubr.msk.f32.gmra.mrb[52].mxu1 %vm416_vm3, %v2524_v6 }
 0x138   : > { %1308 = vmatprep.mubr.f32.mxu0 %v2287_v3  ;;  %1782 = vmatprep.mubr.f32.mxu1 %v2287_v3 }
 0x13a   : > { %v986_v27 = vpop.trf.xlu0  ;;  %v1556_v1 = vpop.trf.xlu1 }
 0x13b   : > { %2219 = vmatmul.mubr.msk.f32.gmra.mrb[84].mxu0 %vm416_vm3, %v986_v27  ;;  %2238 = vmatmul.mubr.msk.f32.gmra.mrb[54].mxu1 %vm416_vm3, %v1524_v9 }
 0x13c   : > { %1314 = vmatprep.mubr.f32.mxu0 %v2287_v3  ;;  %1788 = vmatprep.mubr.f32.mxu1 %v2287_v3 }
 0x13e   : > { %v987_v28 = vpop.trf.xlu0 }
 0x13f   : > { %2220 = vmatmul.mubr.msk.f32.gmra.mrb[86].mxu0 %vm416_vm3, %v987_v28  ;;  %2239 = vmatmul.mubr.msk.f32.gmra.mrb[56].mxu1 %vm416_vm3, %v1525_v11 }
 0x140   : > { %1320 = vmatprep.mubr.f32.mxu0 %v2287_v3  ;;  %1794 = vmatprep.mubr.f32.mxu1 %v2287_v3 }
 0x142   : > { %v988_v30 = vpop.trf.xlu0 }
 0x143   : > { %2221 = vmatmul.mubr.msk.f32.gmra.mrb[88].mxu0 %vm416_vm3, %v988_v30  ;;  %2240 = vmatmul.mubr.msk.f32.gmra.mrb[58].mxu1 %vm416_vm3, %v1526_v14 }
 0x144   : > { %1326 = vmatprep.mubr.f32.mxu0 %v2287_v3  ;;  %1800 = vmatprep.mubr.f32.mxu1 %v2287_v3 }
 0x146   : > { %v989_v32 = vpop.trf.xlu0 }
 0x147   : > { %2222 = vmatmul.mubr.msk.f32.gmra.mrb[90].mxu0 %vm416_vm3, %v989_v32  ;;  %2241 = vmatmul.mubr.msk.f32.gmra.mrb[60].mxu1 %vm416_vm3, %v1527_v16  ;;  %v1557_v16 = vpop.trf.xlu1 }
 0x148   : > { %1332 = vmatprep.mubr.f32.mxu0 %v2287_v3  ;;  %1806 = vmatprep.mubr.f32.mxu1 %v2287_v3 }
 0x14a   : > { %v990_v33 = vpop.trf.xlu0 }
 0x14b   : > { %2223 = vmatmul.mubr.msk.f32.gmra.mrb[92].mxu0 %vm416_vm3, %v990_v33  ;;  %2242 = vmatmul.mubr.msk.f32.gmra.mrb[62].mxu1 %vm416_vm3, %v1528_v19  ;;  %v1558_v28 = vpop.trf.xlu1 }
 0x14c   : > { %1338 = vmatprep.mubr.f32.mxu0 %v2287_v3  ;;  %1812 = vmatprep.mubr.f32.mxu1 %v2287_v3 }
 0x14e   : > { %v991_v35 = vpop.trf.xlu0 }
 0x14f   : > { %2224 = vmatmul.mubr.msk.f32.gmra.mrb[94].mxu0 %vm416_vm3, %v991_v35  ;;  %2243 = vmatmul.mubr.msk.f32.gmra.mrb[64].mxu1 %vm416_vm3, %v1529_v21 }
 0x150   : > { %1818 = vmatprep.mubr.f32.mxu1 %v2287_v3 }
 0x153   : > { %2244 = vmatmul.mubr.msk.f32.gmra.mrb[66].mxu1 %vm416_vm3, %v1546_v24 }
 0x154   : > { %1824 = vmatprep.mubr.f32.mxu1 %v2287_v3 }
 0x157   : > { %2245 = vmatmul.mubr.msk.f32.gmra.mrb[68].mxu1 %vm416_vm3, %v1547_v26 }
 0x158   : > { %1830 = vmatprep.mubr.f32.mxu1 %v2287_v3 }
 0x15b   : > { %2246 = vmatmul.mubr.msk.f32.gmra.mrb[70].mxu1 %vm416_vm3, %v1548_v29 }
 0x15c   : > { %1836 = vmatprep.mubr.f32.mxu1 %v2287_v3 }
 0x15f   : > { %2247 = vmatmul.mubr.msk.f32.gmra.mrb[72].mxu1 %vm416_vm3, %v1549_v31 }
 0x160   : > { %1842 = vmatprep.mubr.f32.mxu1 %v2287_v3 }
 0x163   : > { %2248 = vmatmul.mubr.msk.f32.gmra.mrb[74].mxu1 %vm416_vm3, %v1550_v34 }
 0x164   : > { %1848 = vmatprep.mubr.f32.mxu1 %v2287_v3 }
 0x166   : > { %v584_v51 = vpop.f32.mrb[2].mxu0 }
 0x167   : > { %v585_v52 = vadd.f32 %v584_v51, %v2632_v49  ;;  %v586_v53 = vpop.f32.mrb[3].mxu0  ;;  %2249 = vmatmul.mubr.msk.f32.gmra.mrb[76].mxu1 %vm416_vm3, %v1551_v37 }
 0x168   : > { %v587_v54 = vadd.f32 %v586_v53, %v2636_v50  ;;  %1854 = vmatprep.mubr.f32.mxu1 %v2287_v3 }
 0x169   : > { %v775_v60 = vmax.f32 %v585_v52, 0.0 }
 0x16a   : > { %v590_v56 = vpop.f32.mrb[4].mxu0  ;;  %v776_v62 = vmax.f32 %v587_v54, 0.0 }
 0x16b   : > { %v591_v57 = vadd.f32 %v590_v56, %v2632_v49  ;;  %v592_v58 = vpop.f32.mrb[5].mxu0  ;;  %2250 = vmatmul.mubr.msk.f32.gmra.mrb[78].mxu1 %vm416_vm3, %v1552_v39 }
 0x16c   : > { %v593_v59 = vadd.f32 %v592_v58, %v2636_v50  ;;  %1860 = vmatprep.mubr.f32.mxu1 %v2287_v3 }
 0x16d   : > { %v777_v61 = vmax.f32 %v591_v57, 0.0 }
 0x16e   : > { %v778_v63 = vmax.f32 %v593_v59, 0.0  ;;  %v596_v0 = vpop.f32.mrb[6].mxu0 }
 0x16f   : > { %v839_v2 = vadd.f32 %v777_v61, %v775_v60  ;;  %v597_v4 = vadd.f32 %v596_v0, %v2632_v49  ;;  %v598_v5 = vpop.f32.mrb[7].mxu0  ;;  %2251 = vmatmul.mubr.msk.f32.gmra.mrb[80].mxu1 %vm416_vm3, %v1553_v45  ;;  %v1559_v45 = vpop.trf.xlu1 }
 0x170   : > { %v876_v6 = vadd.f32 %v778_v63, %v776_v62  ;;  %v599_v7 = vadd.f32 %v598_v5, %v2636_v50  ;;  %1866 = vmatprep.mubr.f32.mxu1 %v2287_v3 }
 0x171   : > { %v779_v8 = vmax.f32 %v597_v4, 0.0 }
 0x172   : > { %v780_v9 = vmax.f32 %v599_v7, 0.0  ;;  %v602_v10 = vpop.f32.mrb[8].mxu0 }
 0x173   : > { %v840_v11 = vadd.f32 %v839_v2, %v779_v8  ;;  %v603_v12 = vadd.f32 %v602_v10, %v2632_v49  ;;  %v604_v13 = vpop.f32.mrb[9].mxu0  ;;  %2252 = vmatmul.mubr.msk.f32.gmra.mrb[82].mxu1 %vm416_vm3, %v1554_v48  ;;  %v1560_v61 = vpop.trf.xlu1 }
 0x174   : > { %v877_v14 = vadd.f32 %v876_v6, %v780_v9  ;;  %v605_v15 = vadd.f32 %v604_v13, %v2636_v50  ;;  %1872 = vmatprep.mubr.f32.mxu1 %v2287_v3 }
 0x175   : > { %v781_v17 = vmax.f32 %v603_v12, 0.0 }
 0x176   : > { %v782_v18 = vmax.f32 %v605_v15, 0.0  ;;  %v608_v19 = vpop.f32.mrb[10].mxu0 }
 0x177   : > { %v841_v20 = vadd.f32 %v840_v11, %v781_v17  ;;  %v609_v21 = vadd.f32 %v608_v19, %v2632_v49  ;;  %v610_v22 = vpop.f32.mrb[11].mxu0  ;;  %2253 = vmatmul.mubr.msk.f32.gmra.mrb[84].mxu1 %vm416_vm3, %v1555_v55  ;;  %v1561_v12 = vpop.trf.xlu1 }
 0x178   : > { %v878_v23 = vadd.f32 %v877_v14, %v782_v18  ;;  %v611_v24 = vadd.f32 %v610_v22, %v2636_v50  ;;  %1878 = vmatprep.mubr.f32.mxu1 %v2287_v3 }
 0x179   : > { %v783_v25 = vmax.f32 %v609_v21, 0.0 }
 0x17a   : > { %v784_v26 = vmax.f32 %v611_v24, 0.0  ;;  %v614_v27 = vpop.f32.mrb[12].mxu0 }
 0x17b   : > { %v842_v29 = vadd.f32 %v841_v20, %v783_v25  ;;  %v615_v30 = vadd.f32 %v614_v27, %v2632_v49  ;;  %v616_v31 = vpop.f32.mrb[13].mxu0  ;;  %2254 = vmatmul.mubr.msk.f32.gmra.mrb[86].mxu1 %vm416_vm3, %v1556_v1 }
 0x17c   : > { %v879_v32 = vadd.f32 %v878_v23, %v784_v26  ;;  %v617_v33 = vadd.f32 %v616_v31, %v2636_v50  ;;  %1884 = vmatprep.mubr.f32.mxu1 %v2287_v3 }
 0x17d   : > { %v785_v34 = vmax.f32 %v615_v30, 0.0 }
 0x17e   : > { %v786_v35 = vmax.f32 %v617_v33, 0.0  ;;  %v620_v37 = vpop.f32.mrb[14].mxu0 }
 0x17f   : > { %v843_v39 = vadd.f32 %v842_v29, %v785_v34  ;;  %v621_v40 = vadd.f32 %v620_v37, %v2632_v49  ;;  %v622_v41 = vpop.f32.mrb[15].mxu0  ;;  %2255 = vmatmul.mubr.msk.f32.gmra.mrb[88].mxu1 %vm416_vm3, %v1557_v16 }
 0x180   : > { %v880_v43 = vadd.f32 %v879_v32, %v786_v35  ;;  %v623_v44 = vadd.f32 %v622_v41, %v2636_v50  ;;  %1890 = vmatprep.mubr.f32.mxu1 %v2287_v3 }
 0x181   : > { %v787_v48 = vmax.f32 %v621_v40, 0.0 }
 0x182   : > { %v788_v51 = vmax.f32 %v623_v44, 0.0  ;;  %v626_v52 = vpop.f32.mrb[16].mxu0 }
 0x183   : > { %v844_v53 = vadd.f32 %v843_v39, %v787_v48  ;;  %v627_v54 = vadd.f32 %v626_v52, %v2632_v49  ;;  %v628_v55 = vpop.f32.mrb[17].mxu0  ;;  %2256 = vmatmul.mubr.msk.f32.gmra.mrb[90].mxu1 %vm416_vm3, %v1558_v28 }
 0x184   : > { %v881_v56 = vadd.f32 %v880_v43, %v788_v51  ;;  %v629_v57 = vadd.f32 %v628_v55, %v2636_v50  ;;  %1896 = vmatprep.mubr.f32.mxu1 %v2287_v3 }
 0x185   : > { %v789_v58 = vmax.f32 %v627_v54, 0.0  ;;  %v2690_v54 = vrot.slane %v2625_v46, %v2618_v42 }
 0x186   : > { %v790_v59 = vmax.f32 %v629_v57, 0.0  ;;  %v632_v60 = vpop.f32.mrb[18].mxu0 }
 0x187   : > { %v845_v62 = vadd.f32 %v844_v53, %v789_v58  ;;  %v633_v63 = vadd.f32 %v632_v60, %v2632_v49  ;;  %v634_v0 = vpop.f32.mrb[19].mxu0  ;;  %2257 = vmatmul.mubr.msk.f32.gmra.mrb[92].mxu1 %vm416_vm3, %v1559_v45  ;;  %v2695_v58 = vrot.slane %v2629_v47, %v2618_v42 }
 0x188   : > { %v882_v1 = vadd.f32 %v881_v56, %v790_v59  ;;  %v635_v2 = vadd.f32 %v634_v0, %v2636_v50  ;;  %1902 = vmatprep.mubr.f32.mxu1 %v2287_v3 }
 0x189   : > { %v791_v4 = vmax.f32 %v633_v63, 0.0 }
 0x18a   : > { %v792_v5 = vmax.f32 %v635_v2, 0.0  ;;  %v638_v6 = vpop.f32.mrb[20].mxu0 }
 0x18b   : > { %v846_v7 = vadd.f32 %v845_v62, %v791_v4  ;;  %v639_v8 = vadd.f32 %v638_v6, %v2632_v49  ;;  %v640_v9 = vpop.f32.mrb[21].mxu0  ;;  %2258 = vmatmul.mubr.msk.f32.gmra.mrb[94].mxu1 %vm416_vm3, %v1560_v61 }
 0x18c   : > { %v883_v10 = vadd.f32 %v882_v1, %v792_v5  ;;  %v641_v11 = vadd.f32 %v640_v9, %v2636_v50  ;;  %1908 = vmatprep.mubr.f32.mxu1 %v2287_v3 }
 0x18d   : > { %v793_v13 = vmax.f32 %v639_v8, 0.0 }
 0x18e   : > { %v794_v14 = vmax.f32 %v641_v11, 0.0  ;;  %v644_v15 = vpop.f32.mrb[22].mxu0 }
 0x18f   : > { %v847_v16 = vadd.f32 %v846_v7, %v793_v13  ;;  %v645_v17 = vadd.f32 %v644_v15, %v2632_v49  ;;  %v646_v18 = vpop.f32.mrb[23].mxu0  ;;  %2259 = vmatmul.mubr.msk.f32.gmra.mrb[96].mxu1 %vm416_vm3, %v1561_v12 }
 0x190   : > { %v884_v19 = vadd.f32 %v883_v10, %v794_v14  ;;  %v647_v20 = vadd.f32 %v646_v18, %v2636_v50 }
 0x191   : > { %v795_v21 = vmax.f32 %v645_v17, 0.0 }
 0x192   : > { %v796_v22 = vmax.f32 %v647_v20, 0.0  ;;  %v650_v23 = vpop.f32.mrb[24].mxu0 }
 0x193   : > { %v848_v24 = vadd.f32 %v847_v16, %v795_v21  ;;  %v651_v25 = vadd.f32 %v650_v23, %v2632_v49  ;;  %v652_v26 = vpop.f32.mrb[25].mxu0 }
 0x194   : > { %v885_v3 = vadd.f32 %v884_v19, %v796_v22  ;;  %v653_v27 = vadd.f32 %v652_v26, %v2636_v50 }
 0x195   : > { %v797_v28 = vmax.f32 %v651_v25, 0.0 }
 0x196   : > { %v798_v29 = vmax.f32 %v653_v27, 0.0  ;;  %v656_v30 = vpop.f32.mrb[26].mxu0 }
 0x197   : > { %v849_v31 = vadd.f32 %v848_v24, %v797_v28  ;;  %v657_v32 = vadd.f32 %v656_v30, %v2632_v49  ;;  %v658_v33 = vpop.f32.mrb[27].mxu0 }
 0x198   : > { %v886_v34 = vadd.f32 %v885_v3, %v798_v29  ;;  %v659_v35 = vadd.f32 %v658_v33, %v2636_v50 }
 0x199   : > { %v799_v37 = vmax.f32 %v657_v32, 0.0 }
 0x19a   : > { %v800_v39 = vmax.f32 %v659_v35, 0.0  ;;  %v662_v40 = vpop.f32.mrb[28].mxu0 }
 0x19b   : > { %v850_v41 = vadd.f32 %v849_v31, %v799_v37  ;;  %v663_v43 = vadd.f32 %v662_v40, %v2632_v49  ;;  %v664_v44 = vpop.f32.mrb[29].mxu0 }
 0x19c   : > { %v887_v45 = vadd.f32 %v886_v34, %v800_v39  ;;  %v665_v48 = vadd.f32 %v664_v44, %v2636_v50 }
 0x19d   : > { %v801_v51 = vmax.f32 %v663_v43, 0.0 }
 0x19e   : > { %v802_v52 = vmax.f32 %v665_v48, 0.0  ;;  %v668_v53 = vpop.f32.mrb[30].mxu0 }
 0x19f   : > { %v851_v55 = vadd.f32 %v850_v41, %v801_v51  ;;  %v669_v56 = vadd.f32 %v668_v53, %v2632_v49  ;;  %v670_v57 = vpop.f32.mrb[31].mxu0 }
 0x1a0   : > { %v888_v59 = vadd.f32 %v887_v45, %v802_v52  ;;  %v671_v60 = vadd.f32 %v670_v57, %v2636_v50 }
 0x1a1   : > { %v803_v61 = vmax.f32 %v669_v56, 0.0 }
 0x1a2   : > { %v804_v62 = vmax.f32 %v671_v60, 0.0  ;;  %v674_v63 = vpop.f32.mrb[0].mxu1  ;;  %v1154_v0 = vpop.f32.mrb[32].mxu0 }
 0x1a3   : > { %v852_v1 = vadd.f32 %v851_v55, %v803_v61  ;;  %v675_v2 = vadd.f32 %v674_v63, %v2632_v49  ;;  %v676_v4 = vpop.f32.mrb[1].mxu1  ;;  %v1155_v5 = vadd.f32 %v1154_v0, %v2690_v54  ;;  %v1156_v6 = vpop.f32.mrb[33].mxu0 }
 0x1a4   : > { %v889_v7 = vadd.f32 %v888_v59, %v804_v62  ;;  %v677_v8 = vadd.f32 %v676_v4, %v2636_v50  ;;  %v1157_v42 = vadd.f32 %v1156_v6, %v2695_v58 }
 0x1a5   : > { %v805_v9 = vmax.f32 %v675_v2, 0.0  ;;  %v1345_v14 = vmax.f32 %v1155_v5, 0.0 }
 0x1a6   : > { %v806_v10 = vmax.f32 %v677_v8, 0.0  ;;  %v680_v11 = vpop.f32.mrb[2].mxu1  ;;  %v1160_v12 = vpop.f32.mrb[34].mxu0  ;;  %v1346_v20 = vmax.f32 %v1157_v42, 0.0 }
 0x1a7   : > { %v853_v13 = vadd.f32 %v852_v1, %v805_v9  ;;  %v681_v15 = vadd.f32 %v680_v11, %v2632_v49  ;;  %v1161_v16 = vadd.f32 %v1160_v12, %v2690_v54  ;;  %v682_v17 = vpop.f32.mrb[3].mxu1  ;;  %v1162_v18 = vpop.f32.mrb[35].mxu0 }
 0x1a8   : > { %v890_v19 = vadd.f32 %v889_v7, %v806_v10  ;;  %v683_v21 = vadd.f32 %v682_v17, %v2636_v50  ;;  %v1163_v22 = vadd.f32 %v1162_v18, %v2695_v58 }
 0x1a9   : > { %v807_v23 = vmax.f32 %v681_v15, 0.0  ;;  %v1347_v24 = vmax.f32 %v1161_v16, 0.0 }
 0x1aa   : > { %v808_v25 = vmax.f32 %v683_v21, 0.0  ;;  %v1348_v26 = vmax.f32 %v1163_v22, 0.0  ;;  %v686_v3 = vpop.f32.mrb[4].mxu1  ;;  %v1166_v27 = vpop.f32.mrb[36].mxu0 }
 0x1ab   : > { %v854_v28 = vadd.f32 %v853_v13, %v807_v23  ;;  %v1409_v29 = vadd.f32 %v1347_v24, %v1345_v14  ;;  %v687_v30 = vadd.f32 %v686_v3, %v2632_v49  ;;  %v1167_v31 = vadd.f32 %v1166_v27, %v2690_v54  ;;  %v688_v32 = vpop.f32.mrb[5].mxu1  ;;  %v1168_v33 = vpop.f32.mrb[37].mxu0 }
 0x1ac   : > { %v891_v34 = vadd.f32 %v890_v19, %v808_v25  ;;  %v1446_v35 = vadd.f32 %v1348_v26, %v1346_v20  ;;  %v689_v37 = vadd.f32 %v688_v32, %v2636_v50  ;;  %v1169_v39 = vadd.f32 %v1168_v33, %v2695_v58 }
 0x1ad   : > { %v809_v40 = vmax.f32 %v687_v30, 0.0  ;;  %v1349_v41 = vmax.f32 %v1167_v31, 0.0 }
 0x1ae   : > { %v810_v43 = vmax.f32 %v689_v37, 0.0  ;;  %v1350_v44 = vmax.f32 %v1169_v39, 0.0  ;;  %v692_v45 = vpop.f32.mrb[6].mxu1  ;;  %v1172_v48 = vpop.f32.mrb[38].mxu0 }
 0x1af   : > { %v855_v51 = vadd.f32 %v854_v28, %v809_v40  ;;  %v1410_v52 = vadd.f32 %v1409_v29, %v1349_v41  ;;  %v693_v53 = vadd.f32 %v692_v45, %v2632_v49  ;;  %v1173_v55 = vadd.f32 %v1172_v48, %v2690_v54  ;;  %v694_v56 = vpop.f32.mrb[7].mxu1  ;;  %v1174_v57 = vpop.f32.mrb[39].mxu0 }
 0x1b0   : > { %v892_v59 = vadd.f32 %v891_v34, %v810_v43  ;;  %v1447_v60 = vadd.f32 %v1446_v35, %v1350_v44  ;;  %v695_v61 = vadd.f32 %v694_v56, %v2636_v50  ;;  %v1175_v62 = vadd.f32 %v1174_v57, %v2695_v58 }
 0x1b1   : > { %v811_v63 = vmax.f32 %v693_v53, 0.0  ;;  %v1351_v0 = vmax.f32 %v1173_v55, 0.0 }
 0x1b2   : > { %v812_v1 = vmax.f32 %v695_v61, 0.0  ;;  %v1352_v2 = vmax.f32 %v1175_v62, 0.0  ;;  %v698_v4 = vpop.f32.mrb[8].mxu1  ;;  %v1178_v5 = vpop.f32.mrb[40].mxu0 }
 0x1b3   : > { %v856_v6 = vadd.f32 %v855_v51, %v811_v63  ;;  %v1411_v7 = vadd.f32 %v1410_v52, %v1351_v0  ;;  %v699_v8 = vadd.f32 %v698_v4, %v2632_v49  ;;  %v1179_v42 = vadd.f32 %v1178_v5, %v2690_v54  ;;  %v700_v9 = vpop.f32.mrb[9].mxu1  ;;  %v1180_v10 = vpop.f32.mrb[41].mxu0 }
 0x1b4   : > { %v893_v11 = vadd.f32 %v892_v59, %v812_v1  ;;  %v1448_v12 = vadd.f32 %v1447_v60, %v1352_v2  ;;  %v701_v13 = vadd.f32 %v700_v9, %v2636_v50  ;;  %v1181_v14 = vadd.f32 %v1180_v10, %v2695_v58 }
 0x1b5   : > { %v813_v15 = vmax.f32 %v699_v8, 0.0  ;;  %v1353_v16 = vmax.f32 %v1179_v42, 0.0 }
 0x1b6   : > { %v814_v17 = vmax.f32 %v701_v13, 0.0  ;;  %v1354_v18 = vmax.f32 %v1181_v14, 0.0  ;;  %v704_v19 = vpop.f32.mrb[10].mxu1  ;;  %v1184_v20 = vpop.f32.mrb[42].mxu0 }
 0x1b7   : > { %v857_v21 = vadd.f32 %v856_v6, %v813_v15  ;;  %v1412_v22 = vadd.f32 %v1411_v7, %v1353_v16  ;;  %v705_v23 = vadd.f32 %v704_v19, %v2632_v49  ;;  %v1185_v24 = vadd.f32 %v1184_v20, %v2690_v54  ;;  %v706_v25 = vpop.f32.mrb[11].mxu1  ;;  %v1186_v26 = vpop.f32.mrb[43].mxu0 }
 0x1b8   : > { %v894_v3 = vadd.f32 %v893_v11, %v814_v17  ;;  %v1449_v27 = vadd.f32 %v1448_v12, %v1354_v18  ;;  %v707_v28 = vadd.f32 %v706_v25, %v2636_v50  ;;  %v1187_v29 = vadd.f32 %v1186_v26, %v2695_v58 }
 0x1b9   : > { %v815_v30 = vmax.f32 %v705_v23, 0.0  ;;  %v1355_v31 = vmax.f32 %v1185_v24, 0.0 }
 0x1ba   : > { %v816_v32 = vmax.f32 %v707_v28, 0.0  ;;  %v1356_v33 = vmax.f32 %v1187_v29, 0.0  ;;  %v710_v34 = vpop.f32.mrb[12].mxu1  ;;  %v1190_v35 = vpop.f32.mrb[44].mxu0 }
 0x1bb   : > { %v858_v37 = vadd.f32 %v857_v21, %v815_v30  ;;  %v1413_v39 = vadd.f32 %v1412_v22, %v1355_v31  ;;  %v711_v40 = vadd.f32 %v710_v34, %v2632_v49  ;;  %v1191_v41 = vadd.f32 %v1190_v35, %v2690_v54  ;;  %v712_v43 = vpop.f32.mrb[13].mxu1  ;;  %v1192_v44 = vpop.f32.mrb[45].mxu0 }
 0x1bc   : > { %v895_v45 = vadd.f32 %v894_v3, %v816_v32  ;;  %v1450_v48 = vadd.f32 %v1449_v27, %v1356_v33  ;;  %v713_v51 = vadd.f32 %v712_v43, %v2636_v50  ;;  %v1193_v52 = vadd.f32 %v1192_v44, %v2695_v58 }
 0x1bd   : > { %v817_v53 = vmax.f32 %v711_v40, 0.0  ;;  %v1357_v55 = vmax.f32 %v1191_v41, 0.0 }
 0x1be   : > { %v818_v56 = vmax.f32 %v713_v51, 0.0  ;;  %v1358_v57 = vmax.f32 %v1193_v52, 0.0  ;;  %v716_v59 = vpop.f32.mrb[14].mxu1  ;;  %v1196_v60 = vpop.f32.mrb[46].mxu0 }
 0x1bf   : > { %v859_v61 = vadd.f32 %v858_v37, %v817_v53  ;;  %v1414_v62 = vadd.f32 %v1413_v39, %v1357_v55  ;;  %v717_v63 = vadd.f32 %v716_v59, %v2632_v49  ;;  %v1197_v0 = vadd.f32 %v1196_v60, %v2690_v54  ;;  %v718_v1 = vpop.f32.mrb[15].mxu1  ;;  %v1198_v2 = vpop.f32.mrb[47].mxu0 }
 0x1c0   : > { %v896_v4 = vadd.f32 %v895_v45, %v818_v56  ;;  %v1451_v5 = vadd.f32 %v1450_v48, %v1358_v57  ;;  %v719_v6 = vadd.f32 %v718_v1, %v2636_v50  ;;  %v1199_v7 = vadd.f32 %v1198_v2, %v2695_v58 }
 0x1c1   : > { %v819_v8 = vmax.f32 %v717_v63, 0.0  ;;  %v1359_v42 = vmax.f32 %v1197_v0, 0.0 }
 0x1c2   : > { %v820_v9 = vmax.f32 %v719_v6, 0.0  ;;  %v1360_v10 = vmax.f32 %v1199_v7, 0.0  ;;  %v722_v11 = vpop.f32.mrb[16].mxu1  ;;  %v1202_v12 = vpop.f32.mrb[48].mxu0 }
 0x1c3   : > { %v860_v13 = vadd.f32 %v859_v61, %v819_v8  ;;  %v1415_v14 = vadd.f32 %v1414_v62, %v1359_v42  ;;  %v723_v15 = vadd.f32 %v722_v11, %v2632_v49  ;;  %v1203_v16 = vadd.f32 %v1202_v12, %v2690_v54  ;;  %v724_v17 = vpop.f32.mrb[17].mxu1  ;;  %v1204_v18 = vpop.f32.mrb[49].mxu0 }
 0x1c4   : > { %v897_v19 = vadd.f32 %v896_v4, %v820_v9  ;;  %v1452_v20 = vadd.f32 %v1451_v5, %v1360_v10  ;;  %v725_v21 = vadd.f32 %v724_v17, %v2636_v50  ;;  %v1205_v22 = vadd.f32 %v1204_v18, %v2695_v58 }
 0x1c5   : > { %v821_v23 = vmax.f32 %v723_v15, 0.0  ;;  %v1361_v24 = vmax.f32 %v1203_v16, 0.0 }
 0x1c6   : > { %v822_v25 = vmax.f32 %v725_v21, 0.0  ;;  %v1362_v26 = vmax.f32 %v1205_v22, 0.0  ;;  %v728_v3 = vpop.f32.mrb[18].mxu1  ;;  %v1208_v27 = vpop.f32.mrb[50].mxu0 }
 0x1c7   : > { %v861_v28 = vadd.f32 %v860_v13, %v821_v23  ;;  %v1416_v29 = vadd.f32 %v1415_v14, %v1361_v24  ;;  %v729_v30 = vadd.f32 %v728_v3, %v2632_v49  ;;  %v1209_v31 = vadd.f32 %v1208_v27, %v2690_v54  ;;  %v730_v32 = vpop.f32.mrb[19].mxu1  ;;  %v1210_v33 = vpop.f32.mrb[51].mxu0 }
 0x1c8   : > { %v898_v34 = vadd.f32 %v897_v19, %v822_v25  ;;  %v1453_v35 = vadd.f32 %v1452_v20, %v1362_v26  ;;  %v731_v37 = vadd.f32 %v730_v32, %v2636_v50  ;;  %v1211_v39 = vadd.f32 %v1210_v33, %v2695_v58 }
 0x1c9   : > { %v823_v40 = vmax.f32 %v729_v30, 0.0  ;;  %v1363_v41 = vmax.f32 %v1209_v31, 0.0 }
 0x1ca   : > { %v824_v43 = vmax.f32 %v731_v37, 0.0  ;;  %v1364_v44 = vmax.f32 %v1211_v39, 0.0  ;;  %v734_v45 = vpop.f32.mrb[20].mxu1  ;;  %v1214_v48 = vpop.f32.mrb[52].mxu0 }
 0x1cb   : > { %v862_v51 = vadd.f32 %v861_v28, %v823_v40  ;;  %v1417_v52 = vadd.f32 %v1416_v29, %v1363_v41  ;;  %v735_v53 = vadd.f32 %v734_v45, %v2632_v49  ;;  %v1215_v55 = vadd.f32 %v1214_v48, %v2690_v54  ;;  %v736_v56 = vpop.f32.mrb[21].mxu1  ;;  %v1216_v57 = vpop.f32.mrb[53].mxu0 }
 0x1cc   : > { %v899_v59 = vadd.f32 %v898_v34, %v824_v43  ;;  %v1454_v60 = vadd.f32 %v1453_v35, %v1364_v44  ;;  %v737_v61 = vadd.f32 %v736_v56, %v2636_v50  ;;  %v1217_v62 = vadd.f32 %v1216_v57, %v2695_v58 }
 0x1cd   : > { %v825_v63 = vmax.f32 %v735_v53, 0.0  ;;  %v1365_v0 = vmax.f32 %v1215_v55, 0.0 }
 0x1ce   : > { %v826_v1 = vmax.f32 %v737_v61, 0.0  ;;  %v1366_v2 = vmax.f32 %v1217_v62, 0.0  ;;  %v740_v4 = vpop.f32.mrb[22].mxu1  ;;  %v1220_v5 = vpop.f32.mrb[54].mxu0 }
 0x1cf   : > { %v863_v6 = vadd.f32 %v862_v51, %v825_v63  ;;  %v1418_v7 = vadd.f32 %v1417_v52, %v1365_v0  ;;  %v741_v8 = vadd.f32 %v740_v4, %v2632_v49  ;;  %v1221_v42 = vadd.f32 %v1220_v5, %v2690_v54  ;;  %v742_v9 = vpop.f32.mrb[23].mxu1  ;;  %v1222_v10 = vpop.f32.mrb[55].mxu0 }
 0x1d0   : > { %v900_v11 = vadd.f32 %v899_v59, %v826_v1  ;;  %v1455_v12 = vadd.f32 %v1454_v60, %v1366_v2  ;;  %v743_v13 = vadd.f32 %v742_v9, %v2636_v50  ;;  %v1223_v14 = vadd.f32 %v1222_v10, %v2695_v58 }
 0x1d1   : > { %v827_v15 = vmax.f32 %v741_v8, 0.0  ;;  %v1367_v16 = vmax.f32 %v1221_v42, 0.0 }
 0x1d2   : > { %v828_v17 = vmax.f32 %v743_v13, 0.0  ;;  %v1368_v18 = vmax.f32 %v1223_v14, 0.0  ;;  %v746_v19 = vpop.f32.mrb[24].mxu1  ;;  %v1226_v20 = vpop.f32.mrb[56].mxu0 }
 0x1d3   : > { %v864_v21 = vadd.f32 %v863_v6, %v827_v15  ;;  %v1419_v22 = vadd.f32 %v1418_v7, %v1367_v16  ;;  %v747_v23 = vadd.f32 %v746_v19, %v2632_v49  ;;  %v1227_v24 = vadd.f32 %v1226_v20, %v2690_v54  ;;  %v748_v25 = vpop.f32.mrb[25].mxu1  ;;  %v1228_v26 = vpop.f32.mrb[57].mxu0 }
 0x1d4   : > { %v901_v3 = vadd.f32 %v900_v11, %v828_v17  ;;  %v1456_v27 = vadd.f32 %v1455_v12, %v1368_v18  ;;  %v749_v28 = vadd.f32 %v748_v25, %v2636_v50  ;;  %v1229_v29 = vadd.f32 %v1228_v26, %v2695_v58 }
 0x1d5   : > { %v829_v30 = vmax.f32 %v747_v23, 0.0  ;;  %v1369_v31 = vmax.f32 %v1227_v24, 0.0  ;;  %v1489_v23 = vsub.s32 2, %v2608_v38 }
 0x1d6   : > { %v830_v32 = vmax.f32 %v749_v28, 0.0  ;;  %v1370_v33 = vmax.f32 %v1229_v29, 0.0  ;;  %v752_v34 = vpop.f32.mrb[26].mxu1  ;;  %v1232_v35 = vpop.f32.mrb[58].mxu0 }
 0x1d7   : > { %v865_v37 = vadd.f32 %v864_v21, %v829_v30  ;;  %v1420_v39 = vadd.f32 %v1419_v22, %v1369_v31  ;;  %v753_v40 = vadd.f32 %v752_v34, %v2632_v49  ;;  %v1233_v41 = vadd.f32 %v1232_v35, %v2690_v54  ;;  %v754_v43 = vpop.f32.mrb[27].mxu1  ;;  %v1234_v44 = vpop.f32.mrb[59].mxu0 }
 0x1d8   : > { %v902_v45 = vadd.f32 %v901_v3, %v830_v32  ;;  %v1457_v48 = vadd.f32 %v1456_v27, %v1370_v33  ;;  %v755_v51 = vadd.f32 %v754_v43, %v2636_v50  ;;  %v1235_v52 = vadd.f32 %v1234_v44, %v2695_v58 }
 0x1d9   : > { %v831_v53 = vmax.f32 %v753_v40, 0.0  ;;  %v1371_v55 = vmax.f32 %v1233_v41, 0.0  ;;  %v2766_v35 = vrot.slane %v2625_v46, %v1489_v23 }
 0x1da   : > { %v832_v56 = vmax.f32 %v755_v51, 0.0  ;;  %v1372_v57 = vmax.f32 %v1235_v52, 0.0  ;;  %v758_v59 = vpop.f32.mrb[28].mxu1  ;;  %v1238_v60 = vpop.f32.mrb[60].mxu0 }
 0x1db   : > { %v866_v61 = vadd.f32 %v865_v37, %v831_v53  ;;  %v1421_v62 = vadd.f32 %v1420_v39, %v1371_v55  ;;  %v759_v63 = vadd.f32 %v758_v59, %v2632_v49  ;;  %v1239_v0 = vadd.f32 %v1238_v60, %v2690_v54  ;;  %v760_v1 = vpop.f32.mrb[29].mxu1  ;;  %v1240_v2 = vpop.f32.mrb[61].mxu0 }
 0x1dc   : > { %v903_v4 = vadd.f32 %v902_v45, %v832_v56  ;;  %v1458_v5 = vadd.f32 %v1457_v48, %v1372_v57  ;;  %v761_v6 = vadd.f32 %v760_v1, %v2636_v50  ;;  %v1241_v7 = vadd.f32 %v1240_v2, %v2695_v58 }
 0x1dd   : > { %v833_v8 = vmax.f32 %v759_v63, 0.0  ;;  %v1373_v42 = vmax.f32 %v1239_v0, 0.0  ;;  %v2769_v39 = vrot.slane %v2629_v47, %v1489_v23 }
 0x1de   : > { %v834_v9 = vmax.f32 %v761_v6, 0.0  ;;  %v1374_v10 = vmax.f32 %v1241_v7, 0.0  ;;  %v764_v11 = vpop.f32.mrb[30].mxu1  ;;  %v1244_v12 = vpop.f32.mrb[62].mxu0 }
 0x1df   : > { %v867_v13 = vadd.f32 %v866_v61, %v833_v8  ;;  %v1422_v14 = vadd.f32 %v1421_v62, %v1373_v42  ;;  %v765_v15 = vadd.f32 %v764_v11, %v2632_v49  ;;  %v1245_v16 = vadd.f32 %v1244_v12, %v2690_v54  ;;  %v766_v17 = vpop.f32.mrb[31].mxu1  ;;  %v1246_v18 = vpop.f32.mrb[63].mxu0 }
 0x1e0   : > { %v904_v19 = vadd.f32 %v903_v4, %v834_v9  ;;  %v1459_v20 = vadd.f32 %v1458_v5, %v1374_v10  ;;  %v767_v21 = vadd.f32 %v766_v17, %v2636_v50  ;;  %v1247_v22 = vadd.f32 %v1246_v18, %v2695_v58 }
 0x1e1   : > { %v835_v24 = vmax.f32 %v765_v15, 0.0  ;;  %v1375_v25 = vmax.f32 %v1245_v16, 0.0 }
 0x1e2   : > { %v836_v26 = vmax.f32 %v767_v21, 0.0  ;;  %v1376_v3 = vmax.f32 %v1247_v22, 0.0  ;;  %v770_v27 = vpop.f32.mrb[32].mxu1 }
 0x1e3   : > { %v868_v28 = vadd.f32 %v867_v13, %v835_v24  ;;  %v1423_v29 = vadd.f32 %v1422_v14, %v1375_v25  ;;  %v771_v30 = vadd.f32 %v770_v27, %v2632_v49  ;;  %v772_v31 = vpop.f32.mrb[33].mxu1 }
 0x1e4   : > { %v905_v32 = vadd.f32 %v904_v19, %v836_v26  ;;  %v1460_v33 = vadd.f32 %v1459_v20, %v1376_v3  ;;  %v773_v34 = vadd.f32 %v772_v31, %v2636_v50 }
 0x1e5   : > { %v837_v37 = vmax.f32 %v771_v30, 0.0 }
 0x1e6   : > { %v838_v40 = vmax.f32 %v773_v34, 0.0  ;;  %v1250_v41 = vpop.f32.mrb[64].mxu0  ;;  %v1724_v43 = vpop.f32.mrb[34].mxu1 }
 0x1e7   : > { %v2771_v44 = vadd.f32 %v868_v28, %v837_v37  ;;  %v1251_v45 = vadd.f32 %v1250_v41, %v2690_v54  ;;  %v1725_v49 = vadd.f32 %v1724_v43, %v2766_v35  ;;  %v1252_v48 = vpop.f32.mrb[65].mxu0  ;;  %v1726_v51 = vpop.f32.mrb[35].mxu1 }
 0x1e8   : > { %v2775_v52 = vadd.f32 %v905_v32, %v838_v40  ;;  %v1253_v46 = vadd.f32 %v1252_v48, %v2695_v58  ;;  %v1727_v50 = vadd.f32 %v1726_v51, %v2769_v39 }
 0x1e9   : > { %v1377_v53 = vmax.f32 %v1251_v45, 0.0  ;;  %v1915_v2 = vmax.f32 %v1725_v49, 0.0 }
 0x1ea   : > { %v1378_v47 = vmax.f32 %v1253_v46, 0.0  ;;  %v1256_v55 = vpop.f32.mrb[66].mxu0  ;;  %v1730_v56 = vpop.f32.mrb[36].mxu1  ;;  %v1916_v6 = vmax.f32 %v1727_v50, 0.0 }
 0x1eb   : > { %v1424_v57 = vadd.f32 %v1423_v29, %v1377_v53  ;;  %v1257_v59 = vadd.f32 %v1256_v55, %v2690_v54  ;;  %v1731_v60 = vadd.f32 %v1730_v56, %v2766_v35  ;;  %v1258_v61 = vpop.f32.mrb[67].mxu0  ;;  %v1732_v62 = vpop.f32.mrb[37].mxu1 }
 0x1ec   : > { %v1461_v63 = vadd.f32 %v1460_v33, %v1378_v47  ;;  %v1259_v0 = vadd.f32 %v1258_v61, %v2695_v58  ;;  %v1733_v1 = vadd.f32 %v1732_v62, %v2769_v39 }
 0x1ed   : > { %v1379_v4 = vmax.f32 %v1257_v59, 0.0  ;;  %v1917_v5 = vmax.f32 %v1731_v60, 0.0 }
 0x1ee   : > { %v1380_v7 = vmax.f32 %v1259_v0, 0.0  ;;  %v1918_v8 = vmax.f32 %v1733_v1, 0.0  ;;  %v1262_v42 = vpop.f32.mrb[68].mxu0  ;;  %v1736_v9 = vpop.f32.mrb[38].mxu1 }
 0x1ef   : > { %v1425_v10 = vadd.f32 %v1424_v57, %v1379_v4  ;;  %v1979_v11 = vadd.f32 %v1917_v5, %v1915_v2  ;;  %v1263_v12 = vadd.f32 %v1262_v42, %v2690_v54  ;;  %v1264_v13 = vpop.f32.mrb[69].mxu0  ;;  %v1738_v14 = vpop.f32.mrb[39].mxu1  ;;  %v1737_v17 = vadd.f32 %v1736_v9, %v2766_v35 }
 0x1f0   : > { %v1462_v15 = vadd.f32 %v1461_v63, %v1380_v7  ;;  %v2016_v16 = vadd.f32 %v1918_v8, %v1916_v6  ;;  %v1265_v19 = vadd.f32 %v1264_v13, %v2695_v58  ;;  %v1739_v20 = vadd.f32 %v1738_v14, %v2769_v39 }
 0x1f1   : > { %v1381_v18 = vmax.f32 %v1263_v12, 0.0  ;;  %v1919_v21 = vmax.f32 %v1737_v17, 0.0 }
 0x1f2   : > { %v1268_v22 = vpop.f32.mrb[70].mxu0  ;;  %v1742_v23 = vpop.f32.mrb[40].mxu1  ;;  %v1382_v25 = vmax.f32 %v1265_v19, 0.0  ;;  %v1920_v26 = vmax.f32 %v1739_v20, 0.0 }
 0x1f3   : > { %v1426_v24 = vadd.f32 %v1425_v10, %v1381_v18  ;;  %v1270_v3 = vpop.f32.mrb[71].mxu0  ;;  %v1744_v27 = vpop.f32.mrb[41].mxu1  ;;  %v1980_v28 = vadd.f32 %v1979_v11, %v1919_v21  ;;  %v1269_v29 = vadd.f32 %v1268_v22, %v2690_v54  ;;  %v1743_v30 = vadd.f32 %v1742_v23, %v2766_v35 }
 0x1f4   : > { %v1463_v31 = vadd.f32 %v1462_v15, %v1382_v25  ;;  %v2017_v32 = vadd.f32 %v2016_v16, %v1920_v26  ;;  %v1271_v33 = vadd.f32 %v1270_v3, %v2695_v58  ;;  %v1745_v34 = vadd.f32 %v1744_v27, %v2769_v39 }
 0x1f5   : > { %v1383_v37 = vmax.f32 %v1269_v29, 0.0  ;;  %v1921_v40 = vmax.f32 %v1743_v30, 0.0 }
 0x1f6   : > { %v1274_v41 = vpop.f32.mrb[72].mxu0  ;;  %v1748_v43 = vpop.f32.mrb[42].mxu1  ;;  %v1384_v45 = vmax.f32 %v1271_v33, 0.0  ;;  %v1922_v49 = vmax.f32 %v1745_v34, 0.0 }
 0x1f7   : > { %v1275_v48 = vadd.f32 %v1274_v41, %v2690_v54  ;;  %v1749_v51 = vadd.f32 %v1748_v43, %v2766_v35  ;;  %v1276_v46 = vpop.f32.mrb[73].mxu0  ;;  %v1750_v50 = vpop.f32.mrb[43].mxu1  ;;  %v1427_v53 = vadd.f32 %v1426_v24, %v1383_v37  ;;  %v1981_v47 = vadd.f32 %v1980_v28, %v1921_v40 }
 0x1f8   : > { %v1277_v55 = vadd.f32 %v1276_v46, %v2695_v58  ;;  %v1751_v56 = vadd.f32 %v1750_v50, %v2769_v39  ;;  %v1464_v57 = vadd.f32 %v1463_v31, %v1384_v45  ;;  %v2018_v59 = vadd.f32 %v2017_v32, %v1922_v49 }
 0x1f9   : > { %v1385_v60 = vmax.f32 %v1275_v48, 0.0  ;;  %v1923_v61 = vmax.f32 %v1749_v51, 0.0 }
 0x1fa   : > { %v1386_v62 = vmax.f32 %v1277_v55, 0.0  ;;  %v1924_v63 = vmax.f32 %v1751_v56, 0.0  ;;  %v1280_v0 = vpop.f32.mrb[74].mxu0  ;;  %v1754_v1 = vpop.f32.mrb[44].mxu1 }
 0x1fb   : > { %v1428_v2 = vadd.f32 %v1427_v53, %v1385_v60  ;;  %v1982_v4 = vadd.f32 %v1981_v47, %v1923_v61  ;;  %v1281_v5 = vadd.f32 %v1280_v0, %v2690_v54  ;;  %v1755_v6 = vadd.f32 %v1754_v1, %v2766_v35  ;;  %v1282_v7 = vpop.f32.mrb[75].mxu0  ;;  %v1756_v8 = vpop.f32.mrb[45].mxu1 }
 0x1fc   : > { %v1465_v42 = vadd.f32 %v1464_v57, %v1386_v62  ;;  %v2019_v9 = vadd.f32 %v2018_v59, %v1924_v63  ;;  %v1283_v10 = vadd.f32 %v1282_v7, %v2695_v58  ;;  %v1757_v11 = vadd.f32 %v1756_v8, %v2769_v39 }
 0x1fd   : > { %v1387_v12 = vmax.f32 %v1281_v5, 0.0  ;;  %v1925_v13 = vmax.f32 %v1755_v6, 0.0 }
 0x1fe   : > { %v1388_v14 = vmax.f32 %v1283_v10, 0.0  ;;  %v1926_v15 = vmax.f32 %v1757_v11, 0.0  ;;  %v1286_v16 = vpop.f32.mrb[76].mxu0  ;;  %v1760_v17 = vpop.f32.mrb[46].mxu1 }
 0x1ff   : > { %v1429_v18 = vadd.f32 %v1428_v2, %v1387_v12  ;;  %v1983_v19 = vadd.f32 %v1982_v4, %v1925_v13  ;;  %v1287_v20 = vadd.f32 %v1286_v16, %v2690_v54  ;;  %v1761_v21 = vadd.f32 %v1760_v17, %v2766_v35  ;;  %v1288_v22 = vpop.f32.mrb[77].mxu0  ;;  %v1762_v23 = vpop.f32.mrb[47].mxu1 }
 0x200   : > { %v1466_v24 = vadd.f32 %v1465_v42, %v1388_v14  ;;  %v2020_v25 = vadd.f32 %v2019_v9, %v1926_v15  ;;  %v1289_v26 = vadd.f32 %v1288_v22, %v2695_v58  ;;  %v1763_v3 = vadd.f32 %v1762_v23, %v2769_v39 }
 0x201   : > { %v1389_v27 = vmax.f32 %v1287_v20, 0.0  ;;  %v1927_v28 = vmax.f32 %v1761_v21, 0.0 }
 0x202   : > { %v1390_v29 = vmax.f32 %v1289_v26, 0.0  ;;  %v1928_v30 = vmax.f32 %v1763_v3, 0.0  ;;  %v1292_v31 = vpop.f32.mrb[78].mxu0  ;;  %v1766_v32 = vpop.f32.mrb[48].mxu1 }
 0x203   : > { %v1430_v33 = vadd.f32 %v1429_v18, %v1389_v27  ;;  %v1984_v34 = vadd.f32 %v1983_v19, %v1927_v28  ;;  %v1293_v37 = vadd.f32 %v1292_v31, %v2690_v54  ;;  %v1767_v40 = vadd.f32 %v1766_v32, %v2766_v35  ;;  %v1294_v41 = vpop.f32.mrb[79].mxu0  ;;  %v1768_v43 = vpop.f32.mrb[49].mxu1 }
 0x204   : > { %v1467_v45 = vadd.f32 %v1466_v24, %v1390_v29  ;;  %v2021_v49 = vadd.f32 %v2020_v25, %v1928_v30  ;;  %v1295_v48 = vadd.f32 %v1294_v41, %v2695_v58  ;;  %v1769_v51 = vadd.f32 %v1768_v43, %v2769_v39 }
 0x205   : > { %v1391_v46 = vmax.f32 %v1293_v37, 0.0  ;;  %v1929_v50 = vmax.f32 %v1767_v40, 0.0 }
 0x206   : > { %v1392_v53 = vmax.f32 %v1295_v48, 0.0  ;;  %v1930_v47 = vmax.f32 %v1769_v51, 0.0  ;;  %v1298_v55 = vpop.f32.mrb[80].mxu0  ;;  %v1772_v56 = vpop.f32.mrb[50].mxu1 }
 0x207   : > { %v1431_v57 = vadd.f32 %v1430_v33, %v1391_v46  ;;  %v1985_v59 = vadd.f32 %v1984_v34, %v1929_v50  ;;  %v1299_v60 = vadd.f32 %v1298_v55, %v2690_v54  ;;  %v1773_v61 = vadd.f32 %v1772_v56, %v2766_v35  ;;  %v1300_v62 = vpop.f32.mrb[81].mxu0  ;;  %v1774_v63 = vpop.f32.mrb[51].mxu1 }
 0x208   : > { %v1468_v0 = vadd.f32 %v1467_v45, %v1392_v53  ;;  %v2022_v1 = vadd.f32 %v2021_v49, %v1930_v47  ;;  %v1301_v2 = vadd.f32 %v1300_v62, %v2695_v58  ;;  %v1775_v4 = vadd.f32 %v1774_v63, %v2769_v39 }
 0x209   : > { %v1393_v5 = vmax.f32 %v1299_v60, 0.0  ;;  %v1931_v6 = vmax.f32 %v1773_v61, 0.0 }
 0x20a   : > { %v1394_v7 = vmax.f32 %v1301_v2, 0.0  ;;  %v1932_v8 = vmax.f32 %v1775_v4, 0.0  ;;  %v1304_v42 = vpop.f32.mrb[82].mxu0  ;;  %v1778_v9 = vpop.f32.mrb[52].mxu1 }
 0x20b   : > { %v1432_v10 = vadd.f32 %v1431_v57, %v1393_v5  ;;  %v1986_v11 = vadd.f32 %v1985_v59, %v1931_v6  ;;  %v1305_v12 = vadd.f32 %v1304_v42, %v2690_v54  ;;  %v1779_v13 = vadd.f32 %v1778_v9, %v2766_v35  ;;  %v1306_v14 = vpop.f32.mrb[83].mxu0  ;;  %v1780_v15 = vpop.f32.mrb[53].mxu1 }
 0x20c   : > { %v1469_v16 = vadd.f32 %v1468_v0, %v1394_v7  ;;  %v2023_v17 = vadd.f32 %v2022_v1, %v1932_v8  ;;  %v1307_v18 = vadd.f32 %v1306_v14, %v2695_v58  ;;  %v1781_v19 = vadd.f32 %v1780_v15, %v2769_v39 }
 0x20d   : > { %v1395_v20 = vmax.f32 %v1305_v12, 0.0  ;;  %v1933_v21 = vmax.f32 %v1779_v13, 0.0 }
 0x20e   : > { %v1396_v22 = vmax.f32 %v1307_v18, 0.0  ;;  %v1934_v23 = vmax.f32 %v1781_v19, 0.0  ;;  %v1310_v24 = vpop.f32.mrb[84].mxu0  ;;  %v1784_v25 = vpop.f32.mrb[54].mxu1 }
 0x20f   : > { %v1433_v26 = vadd.f32 %v1432_v10, %v1395_v20  ;;  %v1987_v3 = vadd.f32 %v1986_v11, %v1933_v21  ;;  %v1311_v27 = vadd.f32 %v1310_v24, %v2690_v54  ;;  %v1785_v28 = vadd.f32 %v1784_v25, %v2766_v35  ;;  %v1312_v29 = vpop.f32.mrb[85].mxu0  ;;  %v1786_v30 = vpop.f32.mrb[55].mxu1 }
 0x210   : > { %v1470_v31 = vadd.f32 %v1469_v16, %v1396_v22  ;;  %v2024_v32 = vadd.f32 %v2023_v17, %v1934_v23  ;;  %v1313_v33 = vadd.f32 %v1312_v29, %v2695_v58  ;;  %v1787_v34 = vadd.f32 %v1786_v30, %v2769_v39 }
 0x211   : > { %v1397_v37 = vmax.f32 %v1311_v27, 0.0  ;;  %v1935_v40 = vmax.f32 %v1785_v28, 0.0  ;;  %v870_v29 = vrot.slane %v2771_v44, 4  ;;  %v907_v30 = vrot.slane %v2775_v52, 4 }
 0x212   : > { %v1398_v41 = vmax.f32 %v1313_v33, 0.0  ;;  %v1936_v43 = vmax.f32 %v1787_v34, 0.0  ;;  %v1316_v45 = vpop.f32.mrb[86].mxu0  ;;  %v1790_v49 = vpop.f32.mrb[56].mxu1 }
 0x213   : > { %v1434_v48 = vadd.f32 %v1433_v26, %v1397_v37  ;;  %v1988_v51 = vadd.f32 %v1987_v3, %v1935_v40  ;;  %v1317_v46 = vadd.f32 %v1316_v45, %v2690_v54  ;;  %v1791_v50 = vadd.f32 %v1790_v49, %v2766_v35  ;;  %v1318_v53 = vpop.f32.mrb[87].mxu0  ;;  %v1792_v47 = vpop.f32.mrb[57].mxu1 }
 0x214   : > { %v1471_v55 = vadd.f32 %v1470_v31, %v1398_v41  ;;  %v2025_v56 = vadd.f32 %v2024_v32, %v1936_v43  ;;  %v1319_v57 = vadd.f32 %v1318_v53, %v2695_v58  ;;  %v1793_v59 = vadd.f32 %v1792_v47, %v2769_v39 }
 0x215   : > { %v1399_v60 = vmax.f32 %v1317_v46, 0.0  ;;  %v1937_v61 = vmax.f32 %v1791_v50, 0.0 }
 0x216   : > { %v1400_v62 = vmax.f32 %v1319_v57, 0.0  ;;  %v1938_v63 = vmax.f32 %v1793_v59, 0.0  ;;  %v1322_v0 = vpop.f32.mrb[88].mxu0  ;;  %v1796_v1 = vpop.f32.mrb[58].mxu1 }
 0x217   : > { %v1435_v2 = vadd.f32 %v1434_v48, %v1399_v60  ;;  %v1989_v4 = vadd.f32 %v1988_v51, %v1937_v61  ;;  %v1323_v5 = vadd.f32 %v1322_v0, %v2690_v54  ;;  %v1797_v6 = vadd.f32 %v1796_v1, %v2766_v35  ;;  %v1324_v7 = vpop.f32.mrb[89].mxu0  ;;  %v1798_v8 = vpop.f32.mrb[59].mxu1 }
 0x218   : > { %v1472_v42 = vadd.f32 %v1471_v55, %v1400_v62  ;;  %v2026_v9 = vadd.f32 %v2025_v56, %v1938_v63  ;;  %v1325_v10 = vadd.f32 %v1324_v7, %v2695_v58  ;;  %v1799_v11 = vadd.f32 %v1798_v8, %v2769_v39 }
 0x219   : > { %v1401_v12 = vmax.f32 %v1323_v5, 0.0  ;;  %v1939_v13 = vmax.f32 %v1797_v6, 0.0  ;;  %v871_v55 = vadd.f32 %v870_v29, %v2771_v44  ;;  %v908_v56 = vadd.f32 %v907_v30, %v2775_v52 }
 0x21a   : > { %v1402_v14 = vmax.f32 %v1325_v10, 0.0  ;;  %v1940_v15 = vmax.f32 %v1799_v11, 0.0  ;;  %v1328_v16 = vpop.f32.mrb[90].mxu0  ;;  %v1802_v17 = vpop.f32.mrb[60].mxu1 }
 0x21b   : > { %v1436_v18 = vadd.f32 %v1435_v2, %v1401_v12  ;;  %v1990_v19 = vadd.f32 %v1989_v4, %v1939_v13  ;;  %v1329_v20 = vadd.f32 %v1328_v16, %v2690_v54  ;;  %v1803_v21 = vadd.f32 %v1802_v17, %v2766_v35  ;;  %v1330_v22 = vpop.f32.mrb[91].mxu0  ;;  %v1804_v23 = vpop.f32.mrb[61].mxu1 }
 0x21c   : > { %v1473_v24 = vadd.f32 %v1472_v42, %v1402_v14  ;;  %v2027_v25 = vadd.f32 %v2026_v9, %v1940_v15  ;;  %v1331_v26 = vadd.f32 %v1330_v22, %v2695_v58  ;;  %v1805_v3 = vadd.f32 %v1804_v23, %v2769_v39 }
 0x21d   : > { %v1403_v27 = vmax.f32 %v1329_v20, 0.0  ;;  %v1941_v28 = vmax.f32 %v1803_v21, 0.0  ;;  %v872_v11 = vrot.slane %v871_v55, 2  ;;  %v909_v15 = vrot.slane %v908_v56, 2 }
 0x21e   : > { %v1404_v31 = vmax.f32 %v1331_v26, 0.0  ;;  %v1942_v32 = vmax.f32 %v1805_v3, 0.0  ;;  %v1334_v33 = vpop.f32.mrb[92].mxu0  ;;  %v1808_v34 = vpop.f32.mrb[62].mxu1 }
 0x21f   : > { %v1437_v37 = vadd.f32 %v1436_v18, %v1403_v27  ;;  %v1991_v40 = vadd.f32 %v1990_v19, %v1941_v28  ;;  %v1335_v41 = vadd.f32 %v1334_v33, %v2690_v54  ;;  %v1809_v43 = vadd.f32 %v1808_v34, %v2766_v35  ;;  %v1336_v45 = vpop.f32.mrb[93].mxu0  ;;  %v1810_v49 = vpop.f32.mrb[63].mxu1 }
 0x220   : > { %v1474_v48 = vadd.f32 %v1473_v24, %v1404_v31  ;;  %v2028_v51 = vadd.f32 %v2027_v25, %v1942_v32  ;;  %v1337_v46 = vadd.f32 %v1336_v45, %v2695_v58  ;;  %v1811_v50 = vadd.f32 %v1810_v49, %v2769_v39 }
 0x221   : > { %v1405_v53 = vmax.f32 %v1335_v41, 0.0  ;;  %v1943_v47 = vmax.f32 %v1809_v43, 0.0  ;;  %v873_v23 = vadd.f32 %v872_v11, %v871_v55  ;;  %v910_v27 = vadd.f32 %v909_v15, %v908_v56 }
 0x222   : > { %v1406_v57 = vmax.f32 %v1337_v46, 0.0  ;;  %v1944_v59 = vmax.f32 %v1811_v50, 0.0  ;;  %v1340_v60 = vpop.f32.mrb[94].mxu0  ;;  %v1814_v61 = vpop.f32.mrb[64].mxu1 }
 0x223   : > { %v1438_v62 = vadd.f32 %v1437_v37, %v1405_v53  ;;  %v1992_v63 = vadd.f32 %v1991_v40, %v1943_v47  ;;  %v1341_v0 = vadd.f32 %v1340_v60, %v2690_v54  ;;  %v1815_v1 = vadd.f32 %v1814_v61, %v2766_v35  ;;  %v1342_v2 = vpop.f32.mrb[95].mxu0  ;;  %v1816_v4 = vpop.f32.mrb[65].mxu1 }
 0x224   : > { %v1475_v5 = vadd.f32 %v1474_v48, %v1406_v57  ;;  %v2029_v6 = vadd.f32 %v2028_v51, %v1944_v59  ;;  %v1343_v7 = vadd.f32 %v1342_v2, %v2695_v58  ;;  %v1817_v44 = vadd.f32 %v1816_v4, %v2769_v39 }
 0x225   : > { %v1407_v8 = vmax.f32 %v1341_v0, 0.0  ;;  %v1945_v52 = vmax.f32 %v1815_v1, 0.0  ;;  %v874_v40 = vrot.slane %v873_v23, 1  ;;  %v911_v48 = vrot.slane %v910_v27, 1 }
 0x226   : > { %v1408_v42 = vmax.f32 %v1343_v7, 0.0  ;;  %v1946_v9 = vmax.f32 %v1817_v44, 0.0  ;;  %v1820_v10 = vpop.f32.mrb[66].mxu1 }
 0x227   : > { %v1439_v12 = vadd.f32 %v1438_v62, %v1407_v8  ;;  %v1993_v13 = vadd.f32 %v1992_v63, %v1945_v52  ;;  %v1821_v54 = vadd.f32 %v1820_v10, %v2766_v35  ;;  %v1822_v14 = vpop.f32.mrb[67].mxu1  ;;  %v875_v59 = vadd.f32 %v874_v40, %v873_v23 }
 0x228   : > { %v1476_v16 = vadd.f32 %v1475_v5, %v1408_v42  ;;  %v2030_v17 = vadd.f32 %v2029_v6, %v1946_v9  ;;  %v1823_v18 = vadd.f32 %v1822_v14, %v2769_v39  ;;  %v912_v0 = vadd.f32 %v911_v48, %v910_v27 }
 0x229   : > { %v1440_v19 = vrot.slane %v1439_v12, 4  ;;  %v1947_v58 = vmax.f32 %v1821_v54, 0.0 }
 0x22a   : > { %v1477_v20 = vrot.slane %v1476_v16, 4  ;;  %v1948_v21 = vmax.f32 %v1823_v18, 0.0  ;;  %v1826_v22 = vpop.f32.mrb[68].mxu1 }
 0x22b   : > { %v1441_v24 = vadd.f32 %v1440_v19, %v1439_v12  ;;  %v1994_v25 = vadd.f32 %v1993_v13, %v1947_v58  ;;  %v1827_v26 = vadd.f32 %v1826_v22, %v2766_v35  ;;  %v1828_v3 = vpop.f32.mrb[69].mxu1 }
 0x22c   : > { %v1478_v28 = vadd.f32 %v1477_v20, %v1476_v16  ;;  %v2031_v29 = vadd.f32 %v2030_v17, %v1948_v21  ;;  %v1829_v30 = vadd.f32 %v1828_v3, %v2769_v39 }
 0x22d   : > { %v1442_v31 = vrot.slane %v1441_v24, 2  ;;  %v1949_v32 = vmax.f32 %v1827_v26, 0.0 }
 0x22e   : > { %v1479_v33 = vrot.slane %v1478_v28, 2  ;;  %v1950_v34 = vmax.f32 %v1829_v30, 0.0  ;;  %v1832_v37 = vpop.f32.mrb[70].mxu1 }
 0x22f   : > { %v1443_v41 = vadd.f32 %v1442_v31, %v1441_v24  ;;  %v1995_v43 = vadd.f32 %v1994_v25, %v1949_v32  ;;  %v1833_v45 = vadd.f32 %v1832_v37, %v2766_v35  ;;  %v1834_v49 = vpop.f32.mrb[71].mxu1 }
 0x230   : > { %v1480_v51 = vadd.f32 %v1479_v33, %v1478_v28  ;;  %v2032_v46 = vadd.f32 %v2031_v29, %v1950_v34  ;;  %v1835_v50 = vadd.f32 %v1834_v49, %v2769_v39 }
 0x231   : > { %v1444_v53 = vrot.slane %v1443_v41, 1  ;;  %v1951_v47 = vmax.f32 %v1833_v45, 0.0 }
 0x232   : > { %v1481_v55 = vrot.slane %v1480_v51, 1  ;;  %v1952_v56 = vmax.f32 %v1835_v50, 0.0  ;;  %v1838_v57 = vpop.f32.mrb[72].mxu1 }
 0x233   : > { %v1445_v60 = vadd.f32 %v1444_v53, %v1443_v41  ;;  %v1996_v61 = vadd.f32 %v1995_v43, %v1951_v47  ;;  %v1839_v62 = vadd.f32 %v1838_v57, %v2766_v35  ;;  %v1840_v63 = vpop.f32.mrb[73].mxu1 }
 0x234   : > { %v1482_v1 = vadd.f32 %v1481_v55, %v1480_v51  ;;  %v2033_v2 = vadd.f32 %v2032_v46, %v1952_v56  ;;  %v1841_v4 = vadd.f32 %v1840_v63, %v2769_v39 }
 0x235   : > { %v2851_v5 = vadd.f32 %v1445_v60, %v875_v59  ;;  %v1953_v6 = vmax.f32 %v1839_v62, 0.0 }
 0x236   : > { %v2853_v7 = vadd.f32 %v1482_v1, %v912_v0  ;;  %v1954_v44 = vmax.f32 %v1841_v4, 0.0  ;;  %v1844_v8 = vpop.f32.mrb[74].mxu1 }
 0x237   : > { %v1997_v52 = vadd.f32 %v1996_v61, %v1953_v6  ;;  %v1845_v42 = vadd.f32 %v1844_v8, %v2766_v35  ;;  %v1846_v9 = vpop.f32.mrb[75].mxu1 }
 0x238   : > { %v2034_v10 = vadd.f32 %v2033_v2, %v1954_v44  ;;  %v1847_v11 = vadd.f32 %v1846_v9, %v2769_v39 }
 0x239   : > { %v1955_v12 = vmax.f32 %v1845_v42, 0.0 }
 0x23a   : > { %v1956_v13 = vmax.f32 %v1847_v11, 0.0  ;;  %v1850_v54 = vpop.f32.mrb[76].mxu1 }
 0x23b   : > { %v1998_v14 = vadd.f32 %v1997_v52, %v1955_v12  ;;  %v1851_v15 = vadd.f32 %v1850_v54, %v2766_v35  ;;  %v1852_v16 = vpop.f32.mrb[77].mxu1 }
 0x23c   : > { %v2035_v17 = vadd.f32 %v2034_v10, %v1956_v13  ;;  %v1853_v18 = vadd.f32 %v1852_v16, %v2769_v39 }
 0x23d   : > { %v1957_v19 = vmax.f32 %v1851_v15, 0.0 }
 0x23e   : > { %v1958_v58 = vmax.f32 %v1853_v18, 0.0  ;;  %v1856_v20 = vpop.f32.mrb[78].mxu1 }
 0x23f   : > { %v1999_v21 = vadd.f32 %v1998_v14, %v1957_v19  ;;  %v1857_v22 = vadd.f32 %v1856_v20, %v2766_v35  ;;  %v1858_v23 = vpop.f32.mrb[79].mxu1 }
 0x240   : > { %v2036_v24 = vadd.f32 %v2035_v17, %v1958_v58  ;;  %v1859_v25 = vadd.f32 %v1858_v23, %v2769_v39 }
 0x241   : > { %v1959_v26 = vmax.f32 %v1857_v22, 0.0 }
 0x242   : > { %v1960_v3 = vmax.f32 %v1859_v25, 0.0  ;;  %v1862_v27 = vpop.f32.mrb[80].mxu1 }
 0x243   : > { %v2000_v28 = vadd.f32 %v1999_v21, %v1959_v26  ;;  %v1863_v29 = vadd.f32 %v1862_v27, %v2766_v35  ;;  %v1864_v30 = vpop.f32.mrb[81].mxu1 }
 0x244   : > { %v2037_v31 = vadd.f32 %v2036_v24, %v1960_v3  ;;  %v1865_v32 = vadd.f32 %v1864_v30, %v2769_v39 }
 0x245   : > { %v1961_v33 = vmax.f32 %v1863_v29, 0.0 }
 0x246   : > { %v1962_v34 = vmax.f32 %v1865_v32, 0.0  ;;  %v1868_v37 = vpop.f32.mrb[82].mxu1 }
 0x247   : > { %v2001_v40 = vadd.f32 %v2000_v28, %v1961_v33  ;;  %v1869_v41 = vadd.f32 %v1868_v37, %v2766_v35  ;;  %v1870_v43 = vpop.f32.mrb[83].mxu1 }
 0x248   : > { %v2038_v45 = vadd.f32 %v2037_v31, %v1962_v34  ;;  %v1871_v49 = vadd.f32 %v1870_v43, %v2769_v39 }
 0x249   : > { %v1963_v48 = vmax.f32 %v1869_v41, 0.0 }
 0x24a   : > { %v1964_v51 = vmax.f32 %v1871_v49, 0.0  ;;  %v1874_v46 = vpop.f32.mrb[84].mxu1 }
 0x24b   : > { %v2002_v50 = vadd.f32 %v2001_v40, %v1963_v48  ;;  %v1875_v53 = vadd.f32 %v1874_v46, %v2766_v35  ;;  %v1876_v47 = vpop.f32.mrb[85].mxu1 }
 0x24c   : > { %v2039_v55 = vadd.f32 %v2038_v45, %v1964_v51  ;;  %v1877_v56 = vadd.f32 %v1876_v47, %v2769_v39 }
 0x24d   : > { %v1965_v57 = vmax.f32 %v1875_v53, 0.0 }
 0x24e   : > { %v1966_v59 = vmax.f32 %v1877_v56, 0.0  ;;  %v1880_v60 = vpop.f32.mrb[86].mxu1 }
 0x24f   : > { %v2003_v61 = vadd.f32 %v2002_v50, %v1965_v57  ;;  %v1881_v62 = vadd.f32 %v1880_v60, %v2766_v35  ;;  %v1882_v63 = vpop.f32.mrb[87].mxu1  ;;  %v2288_v60 = vmov 1966171168  }
 0x250   : > { %v2040_v0 = vadd.f32 %v2039_v55, %v1966_v59  ;;  %v1883_v1 = vadd.f32 %v1882_v63, %v2769_v39 }
 0x251   : > { %v1967_v2 = vmax.f32 %v1881_v62, 0.0 }
 0x252   : > { %v1968_v4 = vmax.f32 %v1883_v1, 0.0  ;;  %v1886_v6 = vpop.f32.mrb[88].mxu1 }
 0x253   : > { %v2004_v44 = vadd.f32 %v2003_v61, %v1967_v2  ;;  %v1887_v8 = vadd.f32 %v1886_v6, %v2766_v35  ;;  %v1888_v52 = vpop.f32.mrb[89].mxu1  ;;  %v2061_v61 = vunpack.c.l.s4 %v2288_v60 }
 0x254   : > { %v2041_v42 = vadd.f32 %v2040_v0, %v1968_v4  ;;  %v1889_v9 = vadd.f32 %v1888_v52, %v2769_v39 }
 0x255   : > { %v1969_v10 = vmax.f32 %v1887_v8, 0.0 }
 0x256   : > { %v1970_v11 = vmax.f32 %v1889_v9, 0.0  ;;  %v1892_v12 = vpop.f32.mrb[90].mxu1 }
 0x257   : > { %v2005_v13 = vadd.f32 %v2004_v44, %v1969_v10  ;;  %v1893_v54 = vadd.f32 %v1892_v12, %v2766_v35  ;;  %v1894_v14 = vpop.f32.mrb[91].mxu1 }
 0x258   : > { %v2042_v15 = vadd.f32 %v2041_v42, %v1970_v11  ;;  %v1895_v16 = vadd.f32 %v1894_v14, %v2769_v39 }
 0x259   : > { %v1971_v17 = vmax.f32 %v1893_v54, 0.0 }
 0x25a   : > { %v1972_v18 = vmax.f32 %v1895_v16, 0.0  ;;  %v1898_v19 = vpop.f32.mrb[92].mxu1 }
 0x25b   : > { %v2006_v58 = vadd.f32 %v2005_v13, %v1971_v17  ;;  %v1899_v20 = vadd.f32 %v1898_v19, %v2766_v35  ;;  %v1900_v21 = vpop.f32.mrb[93].mxu1 }
 0x25c   : > { %v2043_v22 = vadd.f32 %v2042_v15, %v1972_v18  ;;  %v1901_v23 = vadd.f32 %v1900_v21, %v2769_v39 }
 0x25d   : > { %v1973_v24 = vmax.f32 %v1899_v20, 0.0 }
 0x25e   : > { %v1974_v25 = vmax.f32 %v1901_v23, 0.0  ;;  %v1904_v26 = vpop.f32.mrb[94].mxu1 }
 0x25f   : > { %v2007_v3 = vadd.f32 %v2006_v58, %v1973_v24  ;;  %v1905_v27 = vadd.f32 %v1904_v26, %v2766_v35  ;;  %v1906_v28 = vpop.f32.mrb[95].mxu1 }
 0x260   : > { %v2044_v29 = vadd.f32 %v2043_v22, %v1974_v25  ;;  %v1907_v30 = vadd.f32 %v1906_v28, %v2769_v39 }
 0x261   : > { %v1975_v31 = vmax.f32 %v1905_v27, 0.0 }
 0x262   : > { %v1976_v32 = vmax.f32 %v1907_v30, 0.0  ;;  %v1910_v33 = vpop.f32.mrb[96].mxu1 }
 0x263   : > { %v2008_v34 = vadd.f32 %v2007_v3, %v1975_v31  ;;  %v1911_v37 = vadd.f32 %v1910_v33, %v2766_v35  ;;  %v1912_v40 = vpop.f32.mrb[97].mxu1 }
 0x264   : > { %v2045_v41 = vadd.f32 %v2044_v29, %v1976_v32  ;;  %v1913_v43 = vadd.f32 %v1912_v40, %v2769_v39  ;;  %v2062_v39 = vunpack.c.0.s8 %v2061_v61 }
 0x265   : > { %v1977_v45 = vmax.f32 %v1911_v37, 0.0 }
 0x266   : > { %v1978_v49 = vmax.f32 %v1913_v43, 0.0  ;;  %v2065_v44 = vsub.s32 %v2062_v39, %v2608_v38 }
 0x267   : > { %v2009_v48 = vadd.f32 %v2008_v34, %v1977_v45 }
 0x268   : > { %v2046_v51 = vadd.f32 %v2045_v41, %v1978_v49 }
 0x269   : > { %v2010_v46 = vrot.slane %v2009_v48, 4 }
 0x26a   : > { %v2047_v50 = vrot.slane %v2046_v51, 4 }
 0x26b   : > { %v2011_v53 = vadd.f32 %v2010_v46, %v2009_v48 }
 0x26c   : > { %v2048_v47 = vadd.f32 %v2047_v50, %v2046_v51 }
 0x26d   : > { %v2012_v55 = vrot.slane %v2011_v53, 2 }
 0x26e   : > { %v2049_v56 = vrot.slane %v2048_v47, 2 }
 0x26f   : > { %v2013_v57 = vadd.f32 %v2012_v55, %v2011_v53 }
 0x270   : > { %v2050_v59 = vadd.f32 %v2049_v56, %v2048_v47 }
 0x271   : > { %v2014_v35 = vrot.slane %v2013_v57, 1 }
 0x272   : > { %v2051_v62 = vrot.slane %v2050_v59, 1 }
 0x273   : > { %v2015_v63 = vadd.f32 %v2014_v35, %v2013_v57 }
 0x274   : > { %v2052_v0 = vadd.f32 %v2051_v62, %v2050_v59 }
 0x275   : > { %v2053_v1 = vadd.f32 %v2015_v63, %v2851_v5 }
 0x276   : > { %v2054_v2 = vadd.f32 %v2052_v0, %v2853_v7 }
 0x277   : > { %v2055_v4 = vmul.f32 0.00390625, %v2053_v1 }
 0x278   : > { %v2056_v6 = vmul.f32 0.00390625, %v2054_v2 }
 0x27a   : > { %v2059_v8 = vcombine.low %v2055_v4, %v2056_v6 }
 0x27c   : > { %v2066_v52 = vrot.slane %v2059_v8, %v2065_v44 }
 0x27e   : > { %v2073_v42 = vrot.slane %v2066_v52, %v2065_v44 }
 0x280   : > { %2079 = vst.msk [vmem:[%s239_s14] sm:$0x3] %vm2077_vm4, %v2073_v42 }
 0x281 PF: > { %s15_s18 = sadd.s32 1, %s2285_s18  }
 0x282   : > { %p12_p4 = scmp.ge.s32.totalorder %s15_s18, 4  }
 0x284   :  { %14 = sbr.rel (!%p12_p4) target bundleno = 1 (0x1), region = 75 }

</bundles_post_ra>
